<compile_context>
chip_gen: v7x
topology: tpu7x:2x2x1
jax: 0.10.0
libtpu: 0.0.40
codegen_flags: <defaults>
</compile_context>

<pallas_src>
import functools
import math

import jax
import jax.numpy as jnp
from jax.experimental import pallas as pl
from jax.experimental.pallas import tpu as pltpu


def _layer_norm(x, gamma, beta, eps):
    """Matches the PyTorch reference LayerNorm: unbiased std, eps added to std."""
    d = x.shape[-1]
    mean = jnp.mean(x, axis=-1, keepdims=True)
    centered = x - mean
    var = jnp.sum(centered * centered, axis=-1, keepdims=True) / (d - 1)
    std = jnp.sqrt(var)
    return gamma * centered / (std + eps) + beta


def _attn_sublayer_kernel(x_ref, mask_ref, a_ref, b_ref,
                          wq_ref, bq_ref, wk_ref, bk_ref, wv_ref, bv_ref,
                          wo_ref, bo_ref, o_ref, acc_ref, *, eps, scale):
    h = pl.program_id(1)

    x = x_ref[0].astype(jnp.float32)                      # (S, D)
    y = _layer_norm(x, a_ref[...], b_ref[...], eps)       # (S, D)

    q = jnp.dot(y, wq_ref[0], preferred_element_type=jnp.float32) + bq_ref[0]  # (S, dk)
    k = jnp.dot(y, wk_ref[0], preferred_element_type=jnp.float32) + bk_ref[0]
    v = jnp.dot(y, wv_ref[0], preferred_element_type=jnp.float32) + bv_ref[0]

    scores = jax.lax.dot_general(q, k, (((1,), (1,)), ((), ())),
                                 preferred_element_type=jnp.float32) * scale   # (S, S)
    scores = jnp.where(mask_ref[0] == 0.0, -1e9, scores)
    m = jnp.max(scores, axis=-1, keepdims=True)
    p = jnp.exp(scores - m)
    p = p / jnp.sum(p, axis=-1, keepdims=True)
    # TODO(synk): attention / residual dropout omitted (identity at inference).
    ctx = jnp.dot(p, v, preferred_element_type=jnp.float32)                    # (S, dk)

    @pl.when(h == 0)
    def _():
        acc_ref[...] = jnp.zeros_like(acc_ref)

    # accumulate this head's contribution of the output projection
    acc_ref[...] += jnp.dot(ctx, wo_ref[0], preferred_element_type=jnp.float32)

    @pl.when(h == pl.num_programs(1) - 1)
    def _():
        o_ref[0] = (x + acc_ref[...] + bo_ref[...]).astype(o_ref.dtype)


def _ffn_sublayer_kernel(x_ref, a_ref, b_ref, w1_ref, b1_ref, w2_ref, b2_ref,
                         o_ref, *, eps):
    x = x_ref[...].astype(jnp.float32)                    # (tm, D)
    y = _layer_norm(x, a_ref[...], b_ref[...], eps)
    hidden = jnp.dot(y, w1_ref[...], preferred_element_type=jnp.float32) + b1_ref[...]
    hidden = jnp.maximum(hidden, 0.0)
    # TODO(synk): FFN-internal and residual dropout omitted (identity at inference).
    out = jnp.dot(hidden, w2_ref[...], preferred_element_type=jnp.float32) + b2_ref[...]
    o_ref[...] = (x + out).astype(o_ref.dtype)


@functools.partial(jax.jit, static_argnames=("num_heads", "eps", "row_tile"))
def encoder_layer_forward(x, mask, params, *, num_heads, eps=1e-6, row_tile=None):
    """x: [B, S, D]; mask: [B, 1, S] (1 = keep, 0 = masked); params: dict of weights.

    All linear weights are stored in [in, out] layout (the transpose of PyTorch's
    Linear.weight), converted once at parameter-load time rather than per call.
    """
    B, S, D = x.shape
    H = num_heads
    dk = D // H
    f32 = jnp.float32

    # Per-head weight layouts: leading head axis -> per-head blocks via BlockSpec.
    wq = params["wq"].reshape(D, H, dk).transpose(1, 0, 2)   # [H, D, dk]
    wk = params["wk"].reshape(D, H, dk).transpose(1, 0, 2)
    wv = params["wv"].reshape(D, H, dk).transpose(1, 0, 2)
    wo = params["wo"].reshape(H, dk, D)                      # [H, dk, D]
    bq = params["bq"].reshape(H, 1, dk)
    bk = params["bk"].reshape(H, 1, dk)
    bv = params["bv"].reshape(H, 1, dk)
    bo = params["bo"].reshape(1, D)
    ln1_a = params["ln1_a"].reshape(1, D)
    ln1_b = params["ln1_b"].reshape(1, D)
    ln2_a = params["ln2_a"].reshape(1, D)
    ln2_b = params["ln2_b"].reshape(1, D)
    w1, b1 = params["w1"], params["b1"].reshape(1, -1)       # [D, dff], [1, dff]
    w2, b2 = params["w2"], params["b2"].reshape(1, D)        # [dff, D], [1, D]
    dff = w1.shape[1]

    mask_f = mask.astype(f32)

    # ---------------- sublayer 0: x1 = x + MHA(LN(x), mask) ----------------
    head_w_spec = pl.BlockSpec((1, D, dk), lambda b, h: (h, 0, 0))
    head_b_spec = pl.BlockSpec((1, 1, dk), lambda b, h: (h, 0, 0))
    const_row = pl.BlockSpec((1, D), lambda b, h: (0, 0))

    attn_cost = pl.CostEstimate(
        flops=B * (8 * S * D * D + 4 * S * S * D),
        transcendentals=B * H * S * S,
        bytes_accessed=4 * (2 * B * S * D + B * S + 4 * D * D + 8 * D),
    )

    x1 = pl.pallas_call(
        functools.partial(_attn_sublayer_kernel, eps=eps, scale=1.0 / math.sqrt(dk)),
        out_shape=jax.ShapeDtypeStruct((B, S, D), f32),
        grid_spec=pltpu.PrefetchScalarGridSpec(
            num_scalar_prefetch=0,
            grid=(B, H),
            in_specs=[
                pl.BlockSpec((1, S, D), lambda b, h: (b, 0, 0)),   # x
                pl.BlockSpec((1, 1, S), lambda b, h: (b, 0, 0)),   # mask
                const_row, const_row,                              # ln1 gamma/beta
                head_w_spec, head_b_spec,                          # Wq, bq
                head_w_spec, head_b_spec,                          # Wk, bk
                head_w_spec, head_b_spec,                          # Wv, bv
                pl.BlockSpec((1, dk, D), lambda b, h: (h, 0, 0)),  # Wo (per head)
                const_row,                                         # bo
            ],
            out_specs=pl.BlockSpec((1, S, D), lambda b, h: (b, 0, 0)),
            scratch_shapes=[pltpu.VMEM((S, D), jnp.float32)],
        ),
        compiler_params=pltpu.CompilerParams(
            dimension_semantics=("parallel", "arbitrary")),
        cost_estimate=attn_cost,
    )(x.astype(f32), mask_f, ln1_a, ln1_b, wq, bq, wk, bk, wv, bv, wo, bo)

    # ---------------- sublayer 1: out = x1 + FFN(LN(x1)) ----------------
    N = B * S
    tm = row_tile if row_tile is not None else min(256, ((N + 7) // 8) * 8)
    n_blocks = pl.cdiv(N, tm)
    n_pad = n_blocks * tm
    x2 = x1.reshape(N, D)
    if n_pad != N:
        x2 = jnp.pad(x2, ((0, n_pad - N), (0, 0)))

    ffn_cost = pl.CostEstimate(
        flops=4 * n_pad * D * dff,
        transcendentals=0,
        bytes_accessed=4 * (2 * n_pad * D + 2 * D * dff + D + dff),
    )

    out2 = pl.pallas_call(
        functools.partial(_ffn_sublayer_kernel, eps=eps),
        out_shape=jax.ShapeDtypeStruct((n_pad, D), f32),
        grid_spec=pltpu.PrefetchScalarGridSpec(
            num_scalar_prefetch=0,
            grid=(n_blocks,),
            in_specs=[
                pl.BlockSpec((tm, D), lambda i: (i, 0)),     # x rows
                pl.BlockSpec((1, D), lambda i: (0, 0)),      # ln2 gamma
                pl.BlockSpec((1, D), lambda i: (0, 0)),      # ln2 beta
                pl.BlockSpec((D, dff), lambda i: (0, 0)),    # W1
                pl.BlockSpec((1, dff), lambda i: (0, 0)),    # b1
                pl.BlockSpec((dff, D), lambda i: (0, 0)),    # W2
                pl.BlockSpec((1, D), lambda i: (0, 0)),      # b2
            ],
            out_specs=pl.BlockSpec((tm, D), lambda i: (i, 0)),
        ),
        compiler_params=pltpu.CompilerParams(
            dimension_semantics=("parallel",)),
        cost_estimate=ffn_cost,
    )(x2, ln2_a, ln2_b, w1, b1, w2, b2)

    return out2[:N].reshape(B, S, D)


if __name__ == "__main__":
    jax.config.update("jax_default_matmul_precision", "highest")

    B, S, D, H, DFF = 2, 8, 32, 4, 64
    eps = 1e-6

    key = jax.random.PRNGKey(0)
    keys = jax.random.split(key, 16)

    def u(k, shape, fan_in):
        bound = 1.0 / math.sqrt(fan_in)
        return jax.random.uniform(k, shape, minval=-bound, maxval=bound,
                                  dtype=jnp.float32)

    params = {
        "ln1_a": jnp.ones((D,), jnp.float32), "ln1_b": jnp.zeros((D,), jnp.float32),
        "ln2_a": jnp.ones((D,), jnp.float32), "ln2_b": jnp.zeros((D,), jnp.float32),
        # [in, out] layout (PyTorch Linear.weight transposed once at load time)
        "wq": u(keys[0], (D, D), D), "bq": u(keys[1], (D,), D),
        "wk": u(keys[2], (D, D), D), "bk": u(keys[3], (D,), D),
        "wv": u(keys[4], (D, D), D), "bv": u(keys[5], (D,), D),
        "wo": u(keys[6], (D, D), D), "bo": u(keys[7], (D,), D),
        "w1": u(keys[8], (D, DFF), D), "b1": u(keys[9], (DFF,), D),
        "w2": u(keys[10], (DFF, D), DFF), "b2": u(keys[11], (D,), DFF),
    }

    x = jax.random.normal(keys[12], (B, S, D), dtype=jnp.float32)
    mask = jnp.ones((B, 1, S), dtype=jnp.float32)
    mask = mask.at[1, 0, 6:].set(0.0)   # mask out the last two key positions of batch 1

    out = encoder_layer_forward(x, mask, params, num_heads=H, eps=eps)
    jax.block_until_ready(out)

    # ---- plain-JAX reference mirroring the PyTorch EncoderLayer (dropout = identity) ----
    def ln(t, a, b):
        mean = t.mean(-1, keepdims=True)
        std = jnp.std(t, axis=-1, ddof=1, keepdims=True)   # torch.std is unbiased
        return a * (t - mean) / (std + eps) + b

    def reference(x, mask, p):
        dk = D // H
        y = ln(x, p["ln1_a"], p["ln1_b"])
        q = y @ p["wq"] + p["bq"]
        k = y @ p["wk"] + p["bk"]
        v = y @ p["wv"] + p["bv"]

        def split(t):
            return t.reshape(B, S, H, dk).transpose(0, 2, 1, 3)

        qh, kh, vh = split(q), split(k), split(v)
        scores = jnp.einsum("bhqd,bhkd->bhqk", qh, kh) / math.sqrt(dk)
        scores = jnp.where(mask[:, None, :, :] == 0.0, -1e9, scores)
        p_attn = jax.nn.softmax(scores, axis=-1)
        ctx = jnp.einsum("bhqk,bhkd->bhqd", p_attn, vh)
        ctx = ctx.transpose(0, 2, 1, 3).reshape(B, S, D)
        x1 = x + (ctx @ p["wo"] + p["bo"])
        y2 = ln(x1, p["ln2_a"], p["ln2_b"])
        hidden = jax.nn.relu(y2 @ p["w1"] + p["b1"])
        return x1 + (hidden @ p["w2"] + p["b2"])

    ref = reference(x, mask, params)
    assert out.shape == (B, S, D)
    err = jnp.max(jnp.abs(out - ref))
    assert jnp.allclose(out, ref, atol=1e-4, rtol=1e-4), f"mismatch vs reference: {err}"

    print("KERNEL_OK")
</pallas_src>

<mosaic_0001>
module attributes {stable_mosaic.version = 11 : i64} {
  func.func @_attn_sublayer_kernel(%arg0: i32, %arg1: i32, %arg2: memref<1x8x32xf32, #tpu.memory_space<vmem>>, %arg3: memref<1x1x8xf32, #tpu.memory_space<vmem>>, %arg4: memref<1x32xf32, #tpu.memory_space<vmem>>, %arg5: memref<1x32xf32, #tpu.memory_space<vmem>>, %arg6: memref<1x32x8xf32, #tpu.memory_space<vmem>>, %arg7: memref<1x1x8xf32, #tpu.memory_space<vmem>>, %arg8: memref<1x32x8xf32, #tpu.memory_space<vmem>>, %arg9: memref<1x1x8xf32, #tpu.memory_space<vmem>>, %arg10: memref<1x32x8xf32, #tpu.memory_space<vmem>>, %arg11: memref<1x1x8xf32, #tpu.memory_space<vmem>>, %arg12: memref<1x8x32xf32, #tpu.memory_space<vmem>>, %arg13: memref<1x32xf32, #tpu.memory_space<vmem>>, %arg14: memref<1x8x32xf32, #tpu.memory_space<vmem>>, %arg15: memref<8x32xf32, #tpu.memory_space<vmem>>) attributes {dimension_semantics = [#tpu.dimension_semantics<parallel>, #tpu.dimension_semantics<arbitrary>], iteration_bounds = array<i64: 2, 4>, scalar_prefetch = 0 : i64, scratch_operands = 1 : i64, tpu.core_type = #tpu.core_type<tc>, window_params = [{transform_indices = @transform_0, window_bounds = array<i64: 1, 8, 32>}, {transform_indices = @transform_1, window_bounds = array<i64: 1, 1, 8>}, {pipeline_mode = #tpu.pipeline_mode<synchronous>, transform_indices = @transform_2, window_bounds = array<i64: 1, 32>}, {pipeline_mode = #tpu.pipeline_mode<synchronous>, transform_indices = @transform_3, window_bounds = array<i64: 1, 32>}, {transform_indices = @transform_4, window_bounds = array<i64: 1, 32, 8>}, {transform_indices = @transform_5, window_bounds = array<i64: 1, 1, 8>}, {transform_indices = @transform_6, window_bounds = array<i64: 1, 32, 8>}, {transform_indices = @transform_7, window_bounds = array<i64: 1, 1, 8>}, {transform_indices = @transform_8, window_bounds = array<i64: 1, 32, 8>}, {transform_indices = @transform_9, window_bounds = array<i64: 1, 1, 8>}, {transform_indices = @transform_10, window_bounds = array<i64: 1, 8, 32>}, {pipeline_mode = #tpu.pipeline_mode<synchronous>, transform_indices = @transform_11, window_bounds = array<i64: 1, 32>}, {transform_indices = @transform_12, window_bounds = array<i64: 1, 8, 32>}]} {
    %c0 = arith.constant 0 : index
    %c0_0 = arith.constant 0 : index
    %c0_1 = arith.constant 0 : index
    %0 = vector.load %arg2[%c0, %c0_0, %c0_1] : memref<1x8x32xf32, #tpu.memory_space<vmem>>, vector<1x8x32xf32>
    %1 = vector.shape_cast %0 : vector<1x8x32xf32> to vector<8x32xf32>
    %c0_2 = arith.constant 0 : index
    %c0_3 = arith.constant 0 : index
    %2 = vector.load %arg4[%c0_2, %c0_3] : memref<1x32xf32, #tpu.memory_space<vmem>>, vector<1x32xf32>
    %c0_4 = arith.constant 0 : index
    %c0_5 = arith.constant 0 : index
    %3 = vector.load %arg5[%c0_4, %c0_5] : memref<1x32xf32, #tpu.memory_space<vmem>>, vector<1x32xf32>
    %cst = arith.constant dense<0.000000e+00> : vector<8xf32>
    %4 = vector.multi_reduction <add>, %1, %cst [1] : vector<8x32xf32> to vector<8xf32>
    %5 = vector.shape_cast %4 : vector<8xf32> to vector<8x1xf32>
    %cst_6 = arith.constant 3.200000e+01 : f32
    %6 = vector.broadcast %cst_6 : f32 to vector<8x1xf32>
    %7 = arith.divf %5, %6 : vector<8x1xf32>
    %8 = vector.broadcast %7 : vector<8x1xf32> to vector<8x32xf32>
    %9 = arith.subf %1, %8 : vector<8x32xf32>
    %10 = arith.mulf %9, %9 : vector<8x32xf32>
    %cst_7 = arith.constant dense<0.000000e+00> : vector<8xf32>
    %11 = vector.multi_reduction <add>, %10, %cst_7 [1] : vector<8x32xf32> to vector<8xf32>
    %12 = vector.shape_cast %11 : vector<8xf32> to vector<8x1xf32>
    %cst_8 = arith.constant 3.100000e+01 : f32
    %13 = vector.broadcast %cst_8 : f32 to vector<8x1xf32>
    %14 = arith.divf %12, %13 : vector<8x1xf32>
    %15 = math.sqrt %14 : vector<8x1xf32>
    %16 = vector.broadcast %2 : vector<1x32xf32> to vector<8x32xf32>
    %17 = arith.mulf %16, %9 : vector<8x32xf32>
    %cst_9 = arith.constant 9.99999997E-7 : f32
    %18 = vector.broadcast %cst_9 : f32 to vector<8x1xf32>
    %19 = arith.addf %15, %18 : vector<8x1xf32>
    %20 = vector.broadcast %19 : vector<8x1xf32> to vector<8x32xf32>
    %21 = arith.divf %17, %20 : vector<8x32xf32>
    %22 = vector.broadcast %3 : vector<1x32xf32> to vector<8x32xf32>
    %23 = arith.addf %21, %22 : vector<8x32xf32>
    %c0_10 = arith.constant 0 : index
    %c0_11 = arith.constant 0 : index
    %c0_12 = arith.constant 0 : index
    %24 = vector.load %arg6[%c0_10, %c0_11, %c0_12] : memref<1x32x8xf32, #tpu.memory_space<vmem>>, vector<1x32x8xf32>
    %25 = vector.shape_cast %24 : vector<1x32x8xf32> to vector<32x8xf32>
    %cst_13 = arith.constant dense<0.000000e+00> : vector<8x8xf32>
    %26 = tpu.matmul %23, %25, %cst_13 {dimension_numbers = #tpu.dot_dimension_numbers<[1], [0], [0], [1], [0, 0, 1, 1], [], []>, precision = #tpu.contract_precision<fp32>} : vector<8x32xf32>, vector<32x8xf32>, vector<8x8xf32> -> vector<8x8xf32>
    %c0_14 = arith.constant 0 : index
    %c0_15 = arith.constant 0 : index
    %c0_16 = arith.constant 0 : index
    %27 = vector.load %arg7[%c0_14, %c0_15, %c0_16] : memref<1x1x8xf32, #tpu.memory_space<vmem>>, vector<1x1x8xf32>
    %28 = vector.shape_cast %27 : vector<1x1x8xf32> to vector<1x8xf32>
    %29 = vector.broadcast %28 : vector<1x8xf32> to vector<8x8xf32>
    %30 = arith.addf %26, %29 : vector<8x8xf32>
    %c0_17 = arith.constant 0 : index
    %c0_18 = arith.constant 0 : index
    %c0_19 = arith.constant 0 : index
    %31 = vector.load %arg8[%c0_17, %c0_18, %c0_19] : memref<1x32x8xf32, #tpu.memory_space<vmem>>, vector<1x32x8xf32>
    %32 = vector.shape_cast %31 : vector<1x32x8xf32> to vector<32x8xf32>
    %cst_20 = arith.constant dense<0.000000e+00> : vector<8x8xf32>
    %33 = tpu.matmul %23, %32, %cst_20 {dimension_numbers = #tpu.dot_dimension_numbers<[1], [0], [0], [1], [0, 0, 1, 1], [], []>, precision = #tpu.contract_precision<fp32>} : vector<8x32xf32>, vector<32x8xf32>, vector<8x8xf32> -> vector<8x8xf32>
    %c0_21 = arith.constant 0 : index
    %c0_22 = arith.constant 0 : index
    %c0_23 = arith.constant 0 : index
    %34 = vector.load %arg9[%c0_21, %c0_22, %c0_23] : memref<1x1x8xf32, #tpu.memory_space<vmem>>, vector<1x1x8xf32>
    %35 = vector.shape_cast %34 : vector<1x1x8xf32> to vector<1x8xf32>
    %36 = vector.broadcast %35 : vector<1x8xf32> to vector<8x8xf32>
    %37 = arith.addf %33, %36 : vector<8x8xf32>
    %c0_24 = arith.constant 0 : index
    %c0_25 = arith.constant 0 : index
    %c0_26 = arith.constant 0 : index
    %38 = vector.load %arg10[%c0_24, %c0_25, %c0_26] : memref<1x32x8xf32, #tpu.memory_space<vmem>>, vector<1x32x8xf32>
    %39 = vector.shape_cast %38 : vector<1x32x8xf32> to vector<32x8xf32>
    %cst_27 = arith.constant dense<0.000000e+00> : vector<8x8xf32>
    %40 = tpu.matmul %23, %39, %cst_27 {dimension_numbers = #tpu.dot_dimension_numbers<[1], [0], [0], [1], [0, 0, 1, 1], [], []>, precision = #tpu.contract_precision<fp32>} : vector<8x32xf32>, vector<32x8xf32>, vector<8x8xf32> -> vector<8x8xf32>
    %c0_28 = arith.constant 0 : index
    %c0_29 = arith.constant 0 : index
    %c0_30 = arith.constant 0 : index
    %41 = vector.load %arg11[%c0_28, %c0_29, %c0_30] : memref<1x1x8xf32, #tpu.memory_space<vmem>>, vector<1x1x8xf32>
    %42 = vector.shape_cast %41 : vector<1x1x8xf32> to vector<1x8xf32>
    %43 = vector.broadcast %42 : vector<1x8xf32> to vector<8x8xf32>
    %44 = arith.addf %40, %43 : vector<8x8xf32>
    %cst_31 = arith.constant dense<0.000000e+00> : vector<8x8xf32>
    %45 = tpu.matmul %30, %37, %cst_31 {dimension_numbers = #tpu.dot_dimension_numbers<[1], [1], [0], [0], [0, 0, 1, 0], [], []>, precision = #tpu.contract_precision<fp32>} : vector<8x8xf32>, vector<8x8xf32>, vector<8x8xf32> -> vector<8x8xf32>
    %cst_32 = arith.constant 0.353553385 : f32
    %46 = vector.broadcast %cst_32 : f32 to vector<8x8xf32>
    %47 = arith.mulf %45, %46 : vector<8x8xf32>
    %c0_33 = arith.constant 0 : index
    %c0_34 = arith.constant 0 : index
    %c0_35 = arith.constant 0 : index
    %48 = vector.load %arg3[%c0_33, %c0_34, %c0_35] : memref<1x1x8xf32, #tpu.memory_space<vmem>>, vector<1x1x8xf32>
    %49 = vector.shape_cast %48 : vector<1x1x8xf32> to vector<1x8xf32>
    %cst_36 = arith.constant 0.000000e+00 : f32
    %50 = vector.broadcast %cst_36 : f32 to vector<1x8xf32>
    %51 = arith.cmpf oeq, %49, %50 : vector<1x8xf32>
    %cst_37 = arith.constant -1.000000e+09 : f32
    %52 = vector.shape_cast %51 : vector<1x8xi1> to vector<1x8xi1>
    %53 = vector.broadcast %52 : vector<1x8xi1> to vector<8x8xi1>
    %54 = vector.broadcast %cst_37 : f32 to vector<8x8xf32>
    %55 = arith.select %53, %54, %47 : vector<8x8xi1>, vector<8x8xf32>
    %cst_38 = arith.constant dense<0xFF800000> : vector<8xf32>
    %56 = vector.multi_reduction <maximumf>, %55, %cst_38 [1] : vector<8x8xf32> to vector<8xf32>
    %57 = vector.shape_cast %56 : vector<8xf32> to vector<8x1xf32>
    %58 = vector.broadcast %57 : vector<8x1xf32> to vector<8x8xf32>
    %59 = arith.subf %55, %58 : vector<8x8xf32>
    %60 = math.exp %59 : vector<8x8xf32>
    %cst_39 = arith.constant dense<0.000000e+00> : vector<8xf32>
    %61 = vector.multi_reduction <add>, %60, %cst_39 [1] : vector<8x8xf32> to vector<8xf32>
    %62 = vector.shape_cast %61 : vector<8xf32> to vector<8x1xf32>
    %63 = vector.broadcast %62 : vector<8x1xf32> to vector<8x8xf32>
    %64 = arith.divf %60, %63 : vector<8x8xf32>
    %cst_40 = arith.constant dense<0.000000e+00> : vector<8x8xf32>
    %65 = tpu.matmul %64, %44, %cst_40 {dimension_numbers = #tpu.dot_dimension_numbers<[1], [0], [0], [1], [0, 0, 1, 1], [], []>, precision = #tpu.contract_precision<fp32>} : vector<8x8xf32>, vector<8x8xf32>, vector<8x8xf32> -> vector<8x8xf32>
    %c0_i32 = arith.constant 0 : i32
    %66 = arith.cmpi eq, %arg1, %c0_i32 : i32
    %67 = arith.extui %66 : i1 to i32
    %c0_i32_41 = arith.constant 0 : i32
    %68 = arith.cmpi ne, %67, %c0_i32_41 : i32
    scf.if %68 {
      %cst_51 = arith.constant 0.000000e+00 : f32
      %78 = vector.broadcast %cst_51 : f32 to vector<8x32xf32>
      %c0_52 = arith.constant 0 : index
      %c0_53 = arith.constant 0 : index
      %79 = vector.load %arg15[%c0_52, %c0_53] : memref<8x32xf32, #tpu.memory_space<vmem>>, vector<8x32xf32>
      tpu.vector_store %arg15[%c0_52, %c0_53], %78 {strides = array<i32>} : memref<8x32xf32, #tpu.memory_space<vmem>>, vector<8x32xf32>,
    } else {
    }
    %c0_42 = arith.constant 0 : index
    %c0_43 = arith.constant 0 : index
    %69 = vector.load %arg15[%c0_42, %c0_43] : memref<8x32xf32, #tpu.memory_space<vmem>>, vector<8x32xf32>
    %c0_44 = arith.constant 0 : index
    %c0_45 = arith.constant 0 : index
    %c0_46 = arith.constant 0 : index
    %70 = vector.load %arg12[%c0_44, %c0_45, %c0_46] : memref<1x8x32xf32, #tpu.memory_space<vmem>>, vector<1x8x32xf32>
    %71 = vector.shape_cast %70 : vector<1x8x32xf32> to vector<8x32xf32>
    %cst_47 = arith.constant dense<0.000000e+00> : vector<8x32xf32>
    %72 = tpu.matmul %65, %71, %cst_47 {dimension_numbers = #tpu.dot_dimension_numbers<[1], [0], [0], [1], [0, 0, 1, 1], [], []>, precision = #tpu.contract_precision<fp32>} : vector<8x8xf32>, vector<8x32xf32>, vector<8x32xf32> -> vector<8x32xf32>
    %73 = arith.addf %69, %72 : vector<8x32xf32>
    %c0_48 = arith.constant 0 : index
    %c0_49 = arith.constant 0 : index
    %74 = vector.load %arg15[%c0_48, %c0_49] : memref<8x32xf32, #tpu.memory_space<vmem>>, vector<8x32xf32>
    tpu.vector_store %arg15[%c0_48, %c0_49], %73 {strides = array<i32>} : memref<8x32xf32, #tpu.memory_space<vmem>>, vector<8x32xf32>,
    %c3_i32 = arith.constant 3 : i32
    %75 = arith.cmpi eq, %arg1, %c3_i32 : i32
    %76 = arith.extui %75 : i1 to i32
    %c0_i32_50 = arith.constant 0 : i32
    %77 = arith.cmpi ne, %76, %c0_i32_50 : i32
    scf.if %77 {
      %c0_51 = arith.constant 0 : index
      %c0_52 = arith.constant 0 : index
      %78 = vector.load %arg15[%c0_51, %c0_52] : memref<8x32xf32, #tpu.memory_space<vmem>>, vector<8x32xf32>
      %79 = arith.addf %1, %78 : vector<8x32xf32>
      %c0_53 = arith.constant 0 : index
      %c0_54 = arith.constant 0 : index
      %80 = vector.load %arg13[%c0_53, %c0_54] : memref<1x32xf32, #tpu.memory_space<vmem>>, vector<1x32xf32>
      %81 = vector.broadcast %80 : vector<1x32xf32> to vector<8x32xf32>
      %82 = arith.addf %79, %81 : vector<8x32xf32>
      %c0_55 = arith.constant 0 : index
      %c0_56 = arith.constant 0 : index
      %c0_57 = arith.constant 0 : index
      %83 = vector.load %arg14[%c0_55, %c0_56, %c0_57] : memref<1x8x32xf32, #tpu.memory_space<vmem>>, vector<1x8x32xf32>
      %84 = vector.shape_cast %83 : vector<1x8x32xf32> to vector<8x32xf32>
      %85 = vector.shape_cast %82 : vector<8x32xf32> to vector<1x8x32xf32>
      tpu.vector_store %arg14[%c0_55, %c0_56, %c0_57], %85 {strides = array<i32>} : memref<1x8x32xf32, #tpu.memory_space<vmem>>, vector<1x8x32xf32>,
    } else {
    }
    return
  }
  func.func @transform_0(%arg0: i32, %arg1: i32) -> (i32, i32, i32) {
    %c0_i32 = arith.constant 0 : i32
    %c0_i32_0 = arith.constant 0 : i32
    %c0_i32_1 = arith.constant 0 : i32
    return %arg0, %c0_i32, %c0_i32_0 : i32, i32, i32
  }
  func.func @transform_1(%arg0: i32, %arg1: i32) -> (i32, i32, i32) {
    %c0_i32 = arith.constant 0 : i32
    %c0_i32_0 = arith.constant 0 : i32
    %c0_i32_1 = arith.constant 0 : i32
    return %arg0, %c0_i32, %c0_i32_0 : i32, i32, i32
  }
  func.func @transform_2(%arg0: i32, %arg1: i32) -> (i32, i32) {
    %c0_i32 = arith.constant 0 : i32
    %c0_i32_0 = arith.constant 0 : i32
    %c0_i32_1 = arith.constant 0 : i32
    return %c0_i32, %c0_i32_0 : i32, i32
  }
  func.func @transform_3(%arg0: i32, %arg1: i32) -> (i32, i32) {
    %c0_i32 = arith.constant 0 : i32
    %c0_i32_0 = arith.constant 0 : i32
    %c0_i32_1 = arith.constant 0 : i32
    return %c0_i32, %c0_i32_0 : i32, i32
  }
  func.func @transform_4(%arg0: i32, %arg1: i32) -> (i32, i32, i32) {
    %c0_i32 = arith.constant 0 : i32
    %c0_i32_0 = arith.constant 0 : i32
    %c0_i32_1 = arith.constant 0 : i32
    return %arg1, %c0_i32, %c0_i32_0 : i32, i32, i32
  }
  func.func @transform_5(%arg0: i32, %arg1: i32) -> (i32, i32, i32) {
    %c0_i32 = arith.constant 0 : i32
    %c0_i32_0 = arith.constant 0 : i32
    %c0_i32_1 = arith.constant 0 : i32
    return %arg1, %c0_i32, %c0_i32_0 : i32, i32, i32
  }
  func.func @transform_6(%arg0: i32, %arg1: i32) -> (i32, i32, i32) {
    %c0_i32 = arith.constant 0 : i32
    %c0_i32_0 = arith.constant 0 : i32
    %c0_i32_1 = arith.constant 0 : i32
    return %arg1, %c0_i32, %c0_i32_0 : i32, i32, i32
  }
  func.func @transform_7(%arg0: i32, %arg1: i32) -> (i32, i32, i32) {
    %c0_i32 = arith.constant 0 : i32
    %c0_i32_0 = arith.constant 0 : i32
    %c0_i32_1 = arith.constant 0 : i32
    return %arg1, %c0_i32, %c0_i32_0 : i32, i32, i32
  }
  func.func @transform_8(%arg0: i32, %arg1: i32) -> (i32, i32, i32) {
    %c0_i32 = arith.constant 0 : i32
    %c0_i32_0 = arith.constant 0 : i32
    %c0_i32_1 = arith.constant 0 : i32
    return %arg1, %c0_i32, %c0_i32_0 : i32, i32, i32
  }
  func.func @transform_9(%arg0: i32, %arg1: i32) -> (i32, i32, i32) {
    %c0_i32 = arith.constant 0 : i32
    %c0_i32_0 = arith.constant 0 : i32
    %c0_i32_1 = arith.constant 0 : i32
    return %arg1, %c0_i32, %c0_i32_0 : i32, i32, i32
  }
  func.func @transform_10(%arg0: i32, %arg1: i32) -> (i32, i32, i32) {
    %c0_i32 = arith.constant 0 : i32
    %c0_i32_0 = arith.constant 0 : i32
    %c0_i32_1 = arith.constant 0 : i32
    return %arg1, %c0_i32, %c0_i32_0 : i32, i32, i32
  }
  func.func @transform_11(%arg0: i32, %arg1: i32) -> (i32, i32) {
    %c0_i32 = arith.constant 0 : i32
    %c0_i32_0 = arith.constant 0 : i32
    %c0_i32_1 = arith.constant 0 : i32
    return %c0_i32, %c0_i32_0 : i32, i32
  }
  func.func @transform_12(%arg0: i32, %arg1: i32) -> (i32, i32, i32) {
    %c0_i32 = arith.constant 0 : i32
    %c0_i32_0 = arith.constant 0 : i32
    %c0_i32_1 = arith.constant 0 : i32
    return %arg0, %c0_i32, %c0_i32_0 : i32, i32, i32
  }
}

module attributes {stable_mosaic.version = 11 : i64} {
  func.func @_ffn_sublayer_kernel(%arg0: i32, %arg1: memref<16x32xf32, #tpu.memory_space<vmem>>, %arg2: memref<1x32xf32, #tpu.memory_space<vmem>>, %arg3: memref<1x32xf32, #tpu.memory_space<vmem>>, %arg4: memref<32x64xf32, #tpu.memory_space<vmem>>, %arg5: memref<1x64xf32, #tpu.memory_space<vmem>>, %arg6: memref<64x32xf32, #tpu.memory_space<vmem>>, %arg7: memref<1x32xf32, #tpu.memory_space<vmem>>, %arg8: memref<16x32xf32, #tpu.memory_space<vmem>>) attributes {dimension_semantics = [#tpu.dimension_semantics<parallel>], iteration_bounds = array<i64: 1>, scalar_prefetch = 0 : i64, scratch_operands = 0 : i64, tpu.core_type = #tpu.core_type<tc>, window_params = [{transform_indices = @transform_0, window_bounds = array<i64: 16, 32>}, {pipeline_mode = #tpu.pipeline_mode<synchronous>, transform_indices = @transform_1, window_bounds = array<i64: 1, 32>}, {pipeline_mode = #tpu.pipeline_mode<synchronous>, transform_indices = @transform_2, window_bounds = array<i64: 1, 32>}, {pipeline_mode = #tpu.pipeline_mode<synchronous>, transform_indices = @transform_3, window_bounds = array<i64: 32, 64>}, {pipeline_mode = #tpu.pipeline_mode<synchronous>, transform_indices = @transform_4, window_bounds = array<i64: 1, 64>}, {pipeline_mode = #tpu.pipeline_mode<synchronous>, transform_indices = @transform_5, window_bounds = array<i64: 64, 32>}, {pipeline_mode = #tpu.pipeline_mode<synchronous>, transform_indices = @transform_6, window_bounds = array<i64: 1, 32>}, {transform_indices = @transform_7, window_bounds = array<i64: 16, 32>}]} {
    %c0 = arith.constant 0 : index
    %c0_0 = arith.constant 0 : index
    %0 = vector.load %arg1[%c0, %c0_0] : memref<16x32xf32, #tpu.memory_space<vmem>>, vector<16x32xf32>
    %c0_1 = arith.constant 0 : index
    %c0_2 = arith.constant 0 : index
    %1 = vector.load %arg2[%c0_1, %c0_2] : memref<1x32xf32, #tpu.memory_space<vmem>>, vector<1x32xf32>
    %c0_3 = arith.constant 0 : index
    %c0_4 = arith.constant 0 : index
    %2 = vector.load %arg3[%c0_3, %c0_4] : memref<1x32xf32, #tpu.memory_space<vmem>>, vector<1x32xf32>
    %cst = arith.constant dense<0.000000e+00> : vector<16xf32>
    %3 = vector.multi_reduction <add>, %0, %cst [1] : vector<16x32xf32> to vector<16xf32>
    %4 = vector.shape_cast %3 : vector<16xf32> to vector<16x1xf32>
    %cst_5 = arith.constant 3.200000e+01 : f32
    %5 = vector.broadcast %cst_5 : f32 to vector<16x1xf32>
    %6 = arith.divf %4, %5 : vector<16x1xf32>
    %7 = vector.broadcast %6 : vector<16x1xf32> to vector<16x32xf32>
    %8 = arith.subf %0, %7 : vector<16x32xf32>
    %9 = arith.mulf %8, %8 : vector<16x32xf32>
    %cst_6 = arith.constant dense<0.000000e+00> : vector<16xf32>
    %10 = vector.multi_reduction <add>, %9, %cst_6 [1] : vector<16x32xf32> to vector<16xf32>
    %11 = vector.shape_cast %10 : vector<16xf32> to vector<16x1xf32>
    %cst_7 = arith.constant 3.100000e+01 : f32
    %12 = vector.broadcast %cst_7 : f32 to vector<16x1xf32>
    %13 = arith.divf %11, %12 : vector<16x1xf32>
    %14 = math.sqrt %13 : vector<16x1xf32>
    %15 = vector.broadcast %1 : vector<1x32xf32> to vector<16x32xf32>
    %16 = arith.mulf %15, %8 : vector<16x32xf32>
    %cst_8 = arith.constant 9.99999997E-7 : f32
    %17 = vector.broadcast %cst_8 : f32 to vector<16x1xf32>
    %18 = arith.addf %14, %17 : vector<16x1xf32>
    %19 = vector.broadcast %18 : vector<16x1xf32> to vector<16x32xf32>
    %20 = arith.divf %16, %19 : vector<16x32xf32>
    %21 = vector.broadcast %2 : vector<1x32xf32> to vector<16x32xf32>
    %22 = arith.addf %20, %21 : vector<16x32xf32>
    %c0_9 = arith.constant 0 : index
    %c0_10 = arith.constant 0 : index
    %23 = vector.load %arg4[%c0_9, %c0_10] : memref<32x64xf32, #tpu.memory_space<vmem>>, vector<32x64xf32>
    %cst_11 = arith.constant dense<0.000000e+00> : vector<16x64xf32>
    %24 = tpu.matmul %22, %23, %cst_11 {dimension_numbers = #tpu.dot_dimension_numbers<[1], [0], [0], [1], [0, 0, 1, 1], [], []>, precision = #tpu.contract_precision<fp32>} : vector<16x32xf32>, vector<32x64xf32>, vector<16x64xf32> -> vector<16x64xf32>
    %c0_12 = arith.constant 0 : index
    %c0_13 = arith.constant 0 : index
    %25 = vector.load %arg5[%c0_12, %c0_13] : memref<1x64xf32, #tpu.memory_space<vmem>>, vector<1x64xf32>
    %26 = vector.broadcast %25 : vector<1x64xf32> to vector<16x64xf32>
    %27 = arith.addf %24, %26 : vector<16x64xf32>
    %cst_14 = arith.constant 0.000000e+00 : f32
    %28 = vector.broadcast %cst_14 : f32 to vector<16x64xf32>
    %29 = arith.maximumf %27, %28 : vector<16x64xf32>
    %c0_15 = arith.constant 0 : index
    %c0_16 = arith.constant 0 : index
    %30 = vector.load %arg6[%c0_15, %c0_16] : memref<64x32xf32, #tpu.memory_space<vmem>>, vector<64x32xf32>
    %cst_17 = arith.constant dense<0.000000e+00> : vector<16x32xf32>
    %31 = tpu.matmul %29, %30, %cst_17 {dimension_numbers = #tpu.dot_dimension_numbers<[1], [0], [0], [1], [0, 0, 1, 1], [], []>, precision = #tpu.contract_precision<fp32>} : vector<16x64xf32>, vector<64x32xf32>, vector<16x32xf32> -> vector<16x32xf32>
    %c0_18 = arith.constant 0 : index
    %c0_19 = arith.constant 0 : index
    %32 = vector.load %arg7[%c0_18, %c0_19] : memref<1x32xf32, #tpu.memory_space<vmem>>, vector<1x32xf32>
    %33 = vector.broadcast %32 : vector<1x32xf32> to vector<16x32xf32>
    %34 = arith.addf %31, %33 : vector<16x32xf32>
    %35 = arith.addf %0, %34 : vector<16x32xf32>
    %c0_20 = arith.constant 0 : index
    %c0_21 = arith.constant 0 : index
    %36 = vector.load %arg8[%c0_20, %c0_21] : memref<16x32xf32, #tpu.memory_space<vmem>>, vector<16x32xf32>
    tpu.vector_store %arg8[%c0_20, %c0_21], %35 {strides = array<i32>} : memref<16x32xf32, #tpu.memory_space<vmem>>, vector<16x32xf32>,
    return
  }
  func.func @transform_0(%arg0: i32) -> (i32, i32) {
    %c0_i32 = arith.constant 0 : i32
    %c0_i32_0 = arith.constant 0 : i32
    return %arg0, %c0_i32 : i32, i32
  }
  func.func @transform_1(%arg0: i32) -> (i32, i32) {
    %c0_i32 = arith.constant 0 : i32
    %c0_i32_0 = arith.constant 0 : i32
    %c0_i32_1 = arith.constant 0 : i32
    return %c0_i32, %c0_i32_0 : i32, i32
  }
  func.func @transform_2(%arg0: i32) -> (i32, i32) {
    %c0_i32 = arith.constant 0 : i32
    %c0_i32_0 = arith.constant 0 : i32
    %c0_i32_1 = arith.constant 0 : i32
    return %c0_i32, %c0_i32_0 : i32, i32
  }
  func.func @transform_3(%arg0: i32) -> (i32, i32) {
    %c0_i32 = arith.constant 0 : i32
    %c0_i32_0 = arith.constant 0 : i32
    %c0_i32_1 = arith.constant 0 : i32
    return %c0_i32, %c0_i32_0 : i32, i32
  }
  func.func @transform_4(%arg0: i32) -> (i32, i32) {
    %c0_i32 = arith.constant 0 : i32
    %c0_i32_0 = arith.constant 0 : i32
    %c0_i32_1 = arith.constant 0 : i32
    return %c0_i32, %c0_i32_0 : i32, i32
  }
  func.func @transform_5(%arg0: i32) -> (i32, i32) {
    %c0_i32 = arith.constant 0 : i32
    %c0_i32_0 = arith.constant 0 : i32
    %c0_i32_1 = arith.constant 0 : i32
    return %c0_i32, %c0_i32_0 : i32, i32
  }
  func.func @transform_6(%arg0: i32) -> (i32, i32) {
    %c0_i32 = arith.constant 0 : i32
    %c0_i32_0 = arith.constant 0 : i32
    %c0_i32_1 = arith.constant 0 : i32
    return %c0_i32, %c0_i32_0 : i32, i32
  }
  func.func @transform_7(%arg0: i32) -> (i32, i32) {
    %c0_i32 = arith.constant 0 : i32
    %c0_i32_0 = arith.constant 0 : i32
    return %arg0, %c0_i32 : i32, i32
  }
}

</mosaic_0001>

<bundles_post_ra>
// kernel: encoder_layer_forward.3
= control target key start
LH: loop header
LB: loop body
LE: loop exit
PB: predicated region body
PF: predicated region fallthrough
CT: control target
= control target key end

     0   :  { %vm31_vm0 = vcmask 261120   ;;  %s1987_s0 = inlined_call_operand.vmem [shape: f32[16,32], index: 0, kind: input, shape index: {}]   ;;  %s1988_s1 = inlined_call_operand.vmem [shape: f32[1,32], index: 1, kind: input, shape index: {}]   ;;  %s1989_s2 = inlined_call_operand.vmem [shape: f32[1,32], index: 2, kind: input, shape index: {}]   ;;  %s1990_s3 = inlined_call_operand.vmem [shape: f32[32,64], index: 3, kind: input, shape index: {}]   ;;  %s1991_s4 = inlined_call_operand.vmem [shape: f32[1,64], index: 4, kind: input, shape index: {}]   ;;  %s1992_s5 = inlined_call_operand.vmem [shape: f32[64,32], index: 5, kind: input, shape index: {}]   ;;  %s1993_s6 = inlined_call_operand.vmem [shape: f32[1,32], index: 6, kind: input, shape index: {}]   ;;  %s1994_s7 = inlined_call_operand.hbm [shape: f32[16,32], index: 7, kind: output, shape index: {}]  }
   0x1   :  { %v1788_v0 = vld [vmem:[%s1987_s0] sm:$0xff]  ;;  %v1793_v1 = vld [vmem:[%s1987_s0 + $0x8] sm:$0xff] }
   0x2   :  { %v32_v2 = vsel %vm31_vm0, %v1788_v0, 0.0 }
   0x3   :  { %12 = vsyncpa [#allocation3], 0  ;;  %33 = vadd.xlane.f32.xlu0 %v32_v2  ;;  %v35_v3 = vsel %vm31_vm0, %v1793_v1, 0.0  ;;  %v90_v14 = vld [vmem:[%s1990_s3] sm:$0xff]  ;;  %v91_v15 = vld [vmem:[%s1990_s3 + $0x8] sm:$0xff]  ;;  %vm652_vm5 = vcmask 523264  }
   0x4   :  { %v92_v16 = vld [vmem:[%s1990_s3 + $0x10] sm:$0xff]  ;;  %v108_v17 = vand.u32 4294901760, %v90_v14  ;;  %v111_v18 = vand.u32 4294901760, %v91_v15  ;;  %v93_v19 = vld [vmem:[%s1990_s3 + $0x18] sm:$0xff]  ;;  %v637_v46 = vld [vmem:[%s1992_s5] sm:$0xff]  ;;  %s1742_s30 = smov [#allocation2]  }
   0x5   :  { %v114_v20 = vand.u32 4294901760, %v92_v16  ;;  %v117_v21 = vand.u32 4294901760, %v93_v19  ;;  %v638_v47 = vld [vmem:[%s1992_s5 + $0x8] sm:$0xff]  ;;  %v639_v48 = vld [vmem:[%s1992_s5 + $0x10] sm:$0xff]  ;;  %v660_v49 = vand.u32 4294901760, %v637_v46  ;;  %v640_v51 = vld [vmem:[%s1992_s5 + $0x18] sm:$0xff] }
   0x6   :  { %v1823_v22 = vpack.c.bf16 %v111_v18, %v108_v17  ;;  %v198_v24 = vsub.f32 %v90_v14, %v108_v17  ;;  %v205_v25 = vsub.f32 %v91_v15, %v111_v18  ;;  %v663_v50 = vand.u32 4294901760, %v638_v47  ;;  %s1248_s8 = sshll.u32 %s1742_s30, 4  ;;  %s1249_s8 = int_to_ptr.vmem [resolvable:$true] %s1248_s8 }
   0x7   :  { %36 = vadd.xlane.f32.xlu0 %v35_v3  ;;  %v1825_v23 = vpack.c.bf16 %v117_v21, %v114_v20  ;;  %v212_v30 = vsub.f32 %v92_v16, %v114_v20  ;;  %v219_v31 = vsub.f32 %v93_v19, %v117_v21  ;;  %v666_v52 = vand.u32 4294901760, %v639_v48  ;;  %s1718_s9 = scalar_lea.vmem %s1249_s8, 256  ;;  %p1723_p1 = scmp.lt.s32.totalorder %s1249_s8, %s1249_s8 }
   0x8   :  { %1540 = vmatprep.subr.bf16.mxu0 %v1823_v22  ;;  %v199_v26 = vand.u32 4294901760, %v198_v24  ;;  %v206_v27 = vand.u32 4294901760, %v205_v25  ;;  %v1836_v42 = vpack.c.bf16 %v205_v25, %v198_v24  ;;  %v669_v53 = vand.u32 4294901760, %v640_v51  ;;  %p1719_p0 = scmp.ne.s32.totalorder %s1249_s8, %s1718_s9  ;;  %p1724_p2 = scmp.lt.s32.totalorder %s1718_s9, %s1718_s9 }
   0x9   :  { %1542 = vmatpush3.bf16.msra.mxu0 %v1823_v22  ;;  %v213_v34 = vand.u32 4294901760, %v212_v30  ;;  %v220_v35 = vand.u32 4294901760, %v219_v31  ;;  %v1838_v43 = vpack.c.bf16 %v219_v31, %v212_v30  ;;  %v1856_v54 = vpack.c.bf16 %v663_v50, %v660_v49 }
   0xa   :  { %1544 = vmatprep.subr.bf16.mxu0 %v1825_v23  ;;  %v200_v28 = vsub.f32 %v198_v24, %v199_v26  ;;  %v207_v29 = vsub.f32 %v205_v25, %v206_v27  ;;  %v1840_v44 = vpack.c.bf16 %v206_v27, %v199_v26  ;;  %v1858_v55 = vsub.f32 %v637_v46, %v660_v49  ;;  %p1725_p3 = por %p1724_p2, %p1723_p1 }
   0xb   :  { %v214_v37 = vsub.f32 %v212_v30, %v213_v34  ;;  %v221_v38 = vsub.f32 %v219_v31, %v220_v35  ;;  %v1842_v45 = vpack.c.bf16 %v220_v35, %v213_v34  ;;  %v1860_v56 = vsub.f32 %v638_v47, %v663_v50  ;;  %v1260_v35 = vld [vmem:[%s1989_s2] ss:$0 sm:$0xff] }
   0xc   :  { %v201_v32 = vand.u32 4294901760, %v200_v28  ;;  %v208_v33 = vand.u32 4294901760, %v207_v29  ;;  %v1862_v57 = vsub.f32 %v639_v48, %v666_v52  ;;  %v1864_v58 = vpack.c.bf16 %v669_v53, %v666_v52  ;;  %p1726_p4 = pnand %p1725_p3, %p1719_p0 }
   0xd   :  { %1546 = vmatpush3.bf16.msra.mxu0 %v1825_v23  ;;  %v215_v39 = vand.u32 4294901760, %v214_v37  ;;  %v222_v40 = vand.u32 4294901760, %v221_v38  ;;  %v1866_v59 = vsub.f32 %v640_v51, %v669_v53  ;;  %v755_v60 = vand.u32 4294901760, %v1858_v55 }
   0xe   :  { %v1831_v36 = vpack.c.bf16 %v208_v33, %v201_v32  ;;  %v762_v61 = vand.u32 4294901760, %v1860_v56  ;;  %v769_v62 = vand.u32 4294901760, %v1862_v57  ;;  %v1259_v32 = vld [vmem:[%s1988_s1] ss:$0 sm:$0xff] }
   0xf   :  { %v1834_v41 = vpack.c.bf16 %v222_v40, %v215_v39  ;;  %v776_v63 = vand.u32 4294901760, %v1866_v59  ;;  %v756_v2 = vsub.f32 %v1858_v55, %v755_v60 }
  0x10   :  { %1548 = vmatprep.subr.bf16.mxu0 %v1831_v36  ;;  %v763_v3 = vsub.f32 %v1860_v56, %v762_v61 }
  0x90   :  { %v34_v4 = vpop.xlane.xlu0 %33 }
  0x91   :  { %v39_v5 = vmul.f32 0.03125, %v34_v4  ;;  %v770_v4 = vsub.f32 %v1862_v57, %v769_v62 }
  0x93   :  { %v1800_v6 = vsub.f32 %v1788_v0, %v39_v5  ;;  %v777_v5 = vsub.f32 %v1866_v59, %v776_v63 }
  0x94   :  { %v37_v7 = vpop.xlane.xlu0 %36 }
  0x95   :  { %v40_v8 = vmul.f32 0.03125, %v37_v7  ;;  %v43_v9 = vmul.f32 %v1800_v6, %v1800_v6  ;;  %v757_v7 = vand.u32 4294901760, %v756_v2  ;;  %v74_v33 = vmul.f32 %v1259_v32, %v1800_v6 }
  0x97   :  { %v1805_v10 = vsub.f32 %v1793_v1, %v40_v8  ;;  %v45_v11 = vsel %vm31_vm0, %v43_v9, 0.0  ;;  %v764_v8 = vand.u32 4294901760, %v763_v3  ;;  %v771_v9 = vand.u32 4294901760, %v770_v4 }
  0x98   :  { %46 = vadd.xlane.f32.xlu1 %v45_v11  ;;  %v778_v11 = vand.u32 4294901760, %v777_v5 }
  0x99   :  { %v44_v12 = vmul.f32 %v1805_v10, %v1805_v10  ;;  %v75_v38 = vmul.f32 %v1259_v32, %v1805_v10  ;;  %v641_v10 = vld [vmem:[%s1992_s5 + $0x20] sm:$0xff] }
  0x9b   :  { %v48_v13 = vsel %vm31_vm0, %v44_v12, 0.0  ;;  %v1603_v12 = vpack.c.bf16 %v764_v8, %v757_v7 }
  0x9c   :  { %49 = vadd.xlane.f32.xlu1 %v48_v13  ;;  %v1607_v13 = vpack.c.bf16 %v778_v11, %v771_v9 }
  0x9d   :  { %1604 = vmatprep.subr.bf16.mxu1 %v1603_v12 }
  0x9e   :  { %1606 = vmatpush3.bf16.msra.mxu1 %v1603_v12 }
  0x9f   :  { %1608 = vmatprep.subr.bf16.mxu1 %v1607_v13 }
  0xa2   :  { %1610 = vmatpush3.bf16.msra.mxu1 %v1607_v13 }
 0x125   :  { %v47_v14 = vpop.xlane.xlu1 %46 }
 0x126   :  { %v52_v15 = vmul.f32 0.032258064, %v47_v14 }
 0x128   :  { %1710 = vrsqrt.f32 %v52_v15  ;;  %vm56_vm1 = vcmp.eq.f32.partialorder %v52_v15, inf  ;;  %v59_v20 = vand.u32 2147483648, %v52_v15  ;;  %vm58_vm2 = vcmp.eq.f32.partialorder %v52_v15, 0.0 }
 0x129   :  { %v50_v16 = vpop.xlane.xlu1 %49 }
 0x12a   :  { %v53_v17 = vmul.f32 0.032258064, %v50_v16 }
 0x12c   :  { %1712 = vrsqrt.f32 %v53_v17  ;;  %vm63_vm3 = vcmp.eq.f32.partialorder %v53_v17, inf  ;;  %v66_v28 = vand.u32 2147483648, %v53_v17  ;;  %vm65_vm4 = vcmp.eq.f32.partialorder %v53_v17, 0.0 }
 0x132   :  { %v1711_v18 = vpop.eup %1710 }
 0x133   :  { %v55_v19 = vmul.f32 %v1711_v18, %v52_v15 }
 0x135   :  { %v57_v21 = vsel %vm56_vm1, %v52_v15, %v55_v19 }
 0x136   :  { %v1713_v24 = vpop.eup %1712  ;;  %v60_v25 = vsel %vm58_vm2, %v59_v20, %v57_v21 }
 0x137   :  { %v76_v26 = vadd.f32 1e-06, %v60_v25  ;;  %v62_v27 = vmul.f32 %v1713_v24, %v53_v17 }
 0x139   :  { %v64_v29 = vsel %vm63_vm3, %v53_v17, %v62_v27  ;;  %1714 = vrcp.f32 %v76_v26 }
 0x13a   :  { %v67_v30 = vsel %vm65_vm4, %v66_v28, %v64_v29  ;;  %v1619_v28 = vpack.c.bf16 %v1860_v56, %v1858_v55 }
 0x13b   :  { %v77_v31 = vadd.f32 1e-06, %v67_v30 }
 0x13d   :  { %1716 = vrcp.f32 %v77_v31 }
 0x143   :  { %v1715_v34 = vpop.eup %1714 }
 0x144   :  { %v79_v37 = vmul.f32 %v1715_v34, %v74_v33 }
 0x146   :  { %v88_v39 = vadd.f32 %v1260_v35, %v79_v37 }
 0x147   :  { %v1717_v40 = vpop.eup %1716 }
 0x148   :  { %v81_v46 = vmul.f32 %v1717_v40, %v75_v38  ;;  %v102_v47 = vsel %vm31_vm0, %v88_v39, 0 }
 0x149   :  { %v176_v48 = vand.u32 4294901760, %v102_v47 }
 0x14a   :  { %v89_v49 = vadd.f32 %v1260_v35, %v81_v46  ;;  %v1261_v35 = vld [vmem:[%s1991_s4] ss:$0 sm:$0xff] }
 0x14b   :  { %v177_v50 = vsub.f32 %v102_v47, %v176_v48 }
 0x14c   :  { %v105_v51 = vsel %vm31_vm0, %v89_v49, 0 }
 0x14d   :  { %v178_v52 = vand.u32 4294901760, %v177_v50  ;;  %v186_v6 = vand.u32 4294901760, %v105_v51 }
 0x14f   :  { %v179_v53 = vsub.f32 %v177_v50, %v178_v52  ;;  %v187_v2 = vsub.f32 %v105_v51, %v186_v6 }
 0x151   :  { %v180_v3 = vand.u32 4294901760, %v179_v53  ;;  %v188_v4 = vand.u32 4294901760, %v187_v2 }
 0x153   :  { %1367 = vmatprep.mubr.f32.mxu0 %v180_v3  ;;  %v189_v5 = vsub.f32 %v187_v2, %v188_v4 }
 0x155   :  { %v190_v7 = vand.u32 4294901760, %v189_v5 }
 0x157   :  { %1368 = vmatmul.mubr.f32.vlgmr.msra.gmra.mrb[0].mxu0 %v190_v7 }
 0x158   :  { %1550 = vmatpush3.bf16.msra.mxu0 %v1831_v36  ;;  %1378 = vmatprep.mubr.f32.mxu0 %v176_v48  ;;  %v672_v36 = vand.u32 4294901760, %v641_v10 }
 0x159   :  { %1552 = vmatprep.subr.bf16.mxu0 %v1834_v41 }
 0x15c   :  { %1554 = vmatpush3.bf16.msra.mxu0 %v1834_v41 }
 0x15d   :  { %1556 = vmatprep.subr.bf16.mxu0 %v1836_v42 }
 0x15f   :  { %1379 = vmatmul.mubr.f32.vlgmr.msra.gmra.mrb[0].mxu0 %v186_v6 }
 0x160   :  { %1558 = vmatpush3.bf16.msra.mxu0 %v1836_v42  ;;  %1389 = vmatprep.mubr.f32.mxu0 %v177_v50 }
 0x161   :  { %1560 = vmatprep.subr.bf16.mxu0 %v1838_v43 }
 0x164   :  { %1562 = vmatpush3.bf16.msra.mxu0 %v1838_v43  ;;  %v643_v43 = vld [vmem:[%s1992_s5 + $0x30] sm:$0xff] }
 0x165   :  { %1564 = vmatprep.subr.bf16.mxu0 %v1823_v22  ;;  %v678_v9 = vand.u32 4294901760, %v643_v43 }
 0x167   :  { %1390 = vmatmul.mubr.f32.vlgmr.msra.gmra.mrb[0].mxu0 %v187_v2  ;;  %v796_v14 = vsub.f32 %v643_v43, %v678_v9 }
 0x168   :  { %1566 = vmatpush3.bf16.msra.mxu0 %v1823_v22  ;;  %1400 = vmatprep.mubr.f32.mxu0 %v178_v52 }
 0x169   :  { %1568 = vmatprep.subr.bf16.mxu0 %v1825_v23  ;;  %v797_v18 = vand.u32 4294901760, %v796_v14 }
 0x16b   :  { %v798_v21 = vsub.f32 %v796_v14, %v797_v18 }
 0x16c   :  { %1570 = vmatpush3.bf16.msra.mxu0 %v1825_v23 }
 0x16d   :  { %1572 = vmatprep.subr.bf16.mxu0 %v1840_v44  ;;  %v799_v25 = vand.u32 4294901760, %v798_v21 }
 0x16f   :  { %1401 = vmatmul.mubr.f32.vlgmr.msra.gmra.mrb[0].mxu0 %v188_v4 }
 0x170   :  { %1574 = vmatpush3.bf16.msra.mxu0 %v1840_v44  ;;  %1411 = vmatprep.mubr.f32.mxu0 %v176_v48  ;;  %v644_v44 = vld [vmem:[%s1992_s5 + $0x38] sm:$0xff] }
 0x171   :  { %1576 = vmatprep.subr.bf16.mxu0 %v1842_v45  ;;  %v681_v11 = vand.u32 4294901760, %v644_v44 }
 0x173   :  { %v803_v15 = vsub.f32 %v644_v44, %v681_v11  ;;  %v1933_v30 = vpack.c.bf16 %v681_v11, %v678_v9 }
 0x174   :  { %1578 = vmatpush3.bf16.msra.mxu0 %v1842_v45 }
 0x175   :  { %1580 = vmatprep.subr.bf16.mxu0 %v1823_v22  ;;  %v804_v19 = vand.u32 4294901760, %v803_v15  ;;  %v1631_v32 = vpack.c.bf16 %v803_v15, %v796_v14 }
 0x177   :  { %1412 = vmatmul.mubr.f32.vlgmr.msra.gmra.mrb[0].mxu0 %v186_v6  ;;  %v805_v24 = vsub.f32 %v803_v15, %v804_v19  ;;  %v1663_v34 = vpack.c.bf16 %v804_v19, %v797_v18 }
 0x178   :  { %1582 = vmatpush3.bf16.msra.mxu0 %v1823_v22  ;;  %1422 = vmatprep.mubr.f32.mxu0 %v176_v48  ;;  %v642_v22 = vld [vmem:[%s1992_s5 + $0x28] sm:$0xff] }
 0x179   :  { %1584 = vmatprep.subr.bf16.mxu0 %v1825_v23  ;;  %v675_v41 = vand.u32 4294901760, %v642_v22  ;;  %v806_v26 = vand.u32 4294901760, %v805_v24 }
 0x17b   :  { %v789_v42 = vsub.f32 %v642_v22, %v675_v41  ;;  %v1615_v27 = vpack.c.bf16 %v806_v26, %v799_v25  ;;  %v1931_v29 = vpack.c.bf16 %v675_v41, %v672_v36  ;;  %v1651_v22 = vpack.c.bf16 %v762_v61, %v755_v60 }
 0x17c   :  { %1586 = vmatpush3.bf16.msra.mxu0 %v1825_v23  ;;  %v782_v23 = vsub.f32 %v641_v10, %v672_v36  ;;  %v1655_v36 = vpack.c.bf16 %v776_v63, %v769_v62 }
 0x17d   :  { %1588 = vmatprep.subr.bf16.mxu0 %v1856_v54  ;;  %v790_v8 = vand.u32 4294901760, %v789_v42 }
 0x17e   :  { %v783_v45 = vand.u32 4294901760, %v782_v23  ;;  %v1627_v31 = vpack.c.bf16 %v789_v42, %v782_v23 }
 0x17f   :  { %1423 = vmatmul.mubr.f32.vlgmr.msra.gmra.mrb[0].mxu0 %v186_v6  ;;  %v791_v13 = vsub.f32 %v789_v42, %v790_v8  ;;  %v1623_v6 = vpack.c.bf16 %v1866_v59, %v1862_v57 }
 0x180   :  { %1590 = vmatpush3.bf16.msra.mxu0 %v1856_v54  ;;  %v784_v12 = vsub.f32 %v782_v23, %v783_v45  ;;  %v1659_v33 = vpack.c.bf16 %v790_v8, %v783_v45 }
 0x181   :  { %1592 = vmatprep.subr.bf16.mxu0 %v1864_v58  ;;  %v792_v17 = vand.u32 4294901760, %v791_v13 }
 0x182   :  { %v785_v16 = vand.u32 4294901760, %v784_v12 }
 0x184   :  { %1594 = vmatpush3.bf16.msra.mxu0 %v1864_v58  ;;  %v1611_v20 = vpack.c.bf16 %v792_v17, %v785_v16 }
 0x185   :  { %1596 = vmatprep.subr.bf16.mxu0 %v1931_v29 }
 0x186   :  { %1612 = vmatprep.subr.bf16.mxu1 %v1611_v20 }
 0x187   :  { %1614 = vmatpush3.bf16.msra.mxu1 %v1611_v20 }
 0x188   :  { %1616 = vmatprep.subr.bf16.mxu1 %v1615_v27  ;;  %1598 = vmatpush3.bf16.msra.mxu0 %v1931_v29 }
 0x189   :  { %1600 = vmatprep.subr.bf16.mxu0 %v1933_v30 }
 0x18b   :  { %1618 = vmatpush3.bf16.msra.mxu1 %v1615_v27 }
 0x18c   :  { %1620 = vmatprep.subr.bf16.mxu1 %v1619_v28  ;;  %1602 = vmatpush3.bf16.msra.mxu0 %v1933_v30 }
 0x252   :  { %v1424_v37 = vpop.f32.mrb[0].mxu0 }
 0x253   :  { %v1683_v38 = vadd.f32 %v1424_v37, %v1261_v35  ;;  %v625_v39 = vpop.f32.mrb[1].mxu0 }
 0x254   :  { %v1684_v40 = vadd.f32 %v1261_v35, %v625_v39 }
 0x255   :  { %v636_v46 = vmax.f32 %v1683_v38, 0.0 }
 0x256   :  { %v635_v47 = vmax.f32 %v1684_v40, 0.0 }
 0x257   :  { %v657_v48 = vsel %vm652_vm5, %v636_v46, 0 }
 0x258   :  { %v742_v49 = vand.u32 4294901760, %v657_v48  ;;  %v654_v50 = vsel %vm652_vm5, %v635_v47, 0 }
 0x259   :  { %v732_v51 = vand.u32 4294901760, %v654_v50 }
 0x25a   :  { %v743_v52 = vsub.f32 %v657_v48, %v742_v49 }
 0x25b   :  { %1460 = vmatprep.mubr.f32.mxu1 %v732_v51  ;;  %v733_v53 = vsub.f32 %v654_v50, %v732_v51 }
 0x25c   :  { %v744_v2 = vand.u32 4294901760, %v743_v52  ;;  %1461 = vmatmul.mubr.f32.vlgmr.msra.gmra.mrb[0].mxu1 %v742_v49 }
 0x25d   :  { %1622 = vmatpush3.bf16.msra.mxu1 %v1619_v28  ;;  %1479 = vmatprep.mubr.f32.mxu1 %v733_v53  ;;  %v734_v3 = vand.u32 4294901760, %v733_v53 }
 0x25e   :  { %1624 = vmatprep.subr.bf16.mxu1 %v1623_v6  ;;  %v745_v4 = vsub.f32 %v743_v52, %v744_v2 }
 0x25f   :  { %v735_v5 = vsub.f32 %v733_v53, %v734_v3 }
 0x260   :  { %v746_v10 = vand.u32 4294901760, %v745_v4 }
 0x261   :  { %1626 = vmatpush3.bf16.msra.mxu1 %v1623_v6  ;;  %v736_v7 = vand.u32 4294901760, %v735_v5 }
 0x262   :  { %1628 = vmatprep.subr.bf16.mxu1 %v1627_v31 }
 0x263   :  { %1441 = vmatprep.mubr.f32.mxu0 %v736_v7 }
 0x264   :  { %1442 = vmatmul.mubr.f32.vlgmr.msra.gmra.mrb[2].mxu0 %v746_v10 }
 0x265   :  { %1630 = vmatpush3.bf16.msra.mxu1 %v1627_v31 }
 0x266   :  { %1632 = vmatprep.subr.bf16.mxu1 %v1631_v32 }
 0x269   :  { %1634 = vmatpush3.bf16.msra.mxu1 %v1631_v32 }
 0x26a   :  { %1636 = vmatprep.subr.bf16.mxu1 %v1856_v54 }
 0x26c   :  { %1480 = vmatmul.mubr.f32.vlgmr.msra.gmra.mrb[0].mxu1 %v743_v52 }
 0x26d   :  { %1638 = vmatpush3.bf16.msra.mxu1 %v1856_v54  ;;  %1498 = vmatprep.mubr.f32.mxu1 %v734_v3 }
 0x26e   :  { %1640 = vmatprep.subr.bf16.mxu1 %v1864_v58 }
 0x271   :  { %1642 = vmatpush3.bf16.msra.mxu1 %v1864_v58 }
 0x272   :  { %1644 = vmatprep.subr.bf16.mxu1 %v1931_v29 }
 0x275   :  { %1646 = vmatpush3.bf16.msra.mxu1 %v1931_v29 }
 0x276   :  { %1648 = vmatprep.subr.bf16.mxu1 %v1933_v30 }
 0x279   :  { %1650 = vmatpush3.bf16.msra.mxu1 %v1933_v30 }
 0x27a   :  { %1652 = vmatprep.subr.bf16.mxu1 %v1651_v22 }
 0x27c   :  { %1499 = vmatmul.mubr.f32.vlgmr.msra.gmra.mrb[0].mxu1 %v744_v2 }
 0x27d   :  { %1654 = vmatpush3.bf16.msra.mxu1 %v1651_v22  ;;  %1517 = vmatprep.mubr.f32.mxu1 %v732_v51 }
 0x27e   :  { %1656 = vmatprep.subr.bf16.mxu1 %v1655_v36 }
 0x281   :  { %1658 = vmatpush3.bf16.msra.mxu1 %v1655_v36 }
 0x282   :  { %1660 = vmatprep.subr.bf16.mxu1 %v1659_v33 }
 0x285   :  { %1662 = vmatpush3.bf16.msra.mxu1 %v1659_v33 }
 0x286   :  { %1664 = vmatprep.subr.bf16.mxu1 %v1663_v34 }
 0x289   :  { %1666 = vmatpush3.bf16.msra.mxu1 %v1663_v34 }
 0x28a   :  { %1668 = vmatprep.subr.bf16.mxu1 %v1856_v54 }
 0x28c   :  { %1518 = vmatmul.mubr.f32.vlgmr.msra.gmra.mrb[0].mxu1 %v742_v49 }
 0x28d   :  { %1670 = vmatpush3.bf16.msra.mxu1 %v1856_v54  ;;  %1536 = vmatprep.mubr.f32.mxu1 %v732_v51  ;;  %v1262_v54 = vld [vmem:[%s1993_s6] ss:$0 sm:$0xff] }
 0x28e   :  { %1672 = vmatprep.subr.bf16.mxu1 %v1864_v58 }
 0x291   :  { %1674 = vmatpush3.bf16.msra.mxu1 %v1864_v58 }
 0x292   :  { %1676 = vmatprep.subr.bf16.mxu1 %v1931_v29 }
 0x295   :  { %1678 = vmatpush3.bf16.msra.mxu1 %v1931_v29 }
 0x296   :  { %1680 = vmatprep.subr.bf16.mxu1 %v1933_v30 }
 0x299   :  { %1682 = vmatpush3.bf16.msra.mxu1 %v1933_v30 }
 0x29c   :  { %1537 = vmatmul.mubr.f32.vlgmr.msra.gmra.mrb[0].mxu1 %v742_v49 }
 0x337   :  { %v1443_v55 = vpop.f32.mrb[2].mxu0 }
 0x338   :  { %v738_v56 = vpop.f32.mrb[3].mxu0  ;;  %v749_v57 = vadd.f32 %v1443_v55, %v1262_v54 }
 0x339   :  { %v739_v59 = vadd.f32 %v1262_v54, %v738_v56 }
 0x36f   :  { %v1538_v60 = vpop.f32.mrb[0].mxu1 }
 0x370   :  { %v1686_v58 = vadd.f32 %v1538_v60, %v749_v57  ;;  %v1229_v61 = vpop.f32.mrb[1].mxu1 }
 0x371   :  { %v1688_v62 = vadd.f32 %v1229_v61, %v739_v59 }
 0x372   :  { %v1240_v63 = vadd.f32 %v1686_v58, %v1793_v1 }
 0x373   :  { %v1239_v41 = vadd.f32 %v1688_v62, %v1788_v0 }
 0x374   :  { %1242 = vst.msk [vmem:[#allocation2 + $0x8] sm:$0xff] %vm31_vm0, %v1240_v63 }
 0x375   :  { %1241 = vst.msk [vmem:[#allocation2] sm:$0xff] %vm31_vm0, %v1239_v41 }
 0x376   :  { %1729 = shalt.err (!%p1726_p4)
}
 0x377   :  { %s1730_s11 = scalar_lea.hbm %s1994_s7, 256 }
 0x378   :  { %p1731_p5 = scmp.ne.s32.totalorder %s1994_s7, %s1730_s11  ;;  %p1734_p6 = scmp.lt.u32.totalorder %s1730_s11, %s1994_s7 }
 0x37a   :  { %p1736_p7 = pnand %p1734_p6, %p1731_p5 }
 0x37c   :  { %1739 = shalt.err (!%p1736_p7)
}
 0x37d   :  { %s1743_s15 = smov 128   ;;  %s1744_s16 = smov 8  }
 0x37e   :  { %1254 = dma.vmem_to_hbm [thread:$0]  %s1249_s8, 256, %s1994_s7, [#allocation3], %s1743_s15, %s1743_s15, %s1744_s16  }
 0x37f   :  { %1740 = dma.done.wait [#allocation3], 256  }
 0x380   :  { %1741 = vsyncadd [#allocation3], 4294967040 }
 0x381   :  { %1258 = vsyncpa [#allocation3], 1 }

// kernel: encoder_layer_forward.2
= control target key start
LH: loop header
LB: loop body
LE: loop exit
PB: predicated region body
PF: predicated region fallthrough
CT: control target
= control target key end

     0   :  { %s4394_s21 = smov 0   ;;  %s4396_s22 = smov 0   ;;  %s4766_s0 = inlined_call_operand.vmem [shape: f32[2,8,32], index: 0, kind: input, shape index: {}]   ;;  %s4767_s1 = inlined_call_operand.vmem [shape: f32[2,1,8], index: 1, kind: input, shape index: {}]   ;;  %s4768_s2 = inlined_call_operand.vmem [shape: f32[1,32], index: 2, kind: input, shape index: {}]   ;;  %s4769_s3 = inlined_call_operand.vmem [shape: f32[1,32], index: 3, kind: input, shape index: {}]   ;;  %s4770_s4 = inlined_call_operand.vmem [shape: f32[4,32,8], index: 4, kind: input, shape index: {}]   ;;  %s4771_s5 = inlined_call_operand.vmem [shape: f32[4,1,8], index: 5, kind: input, shape index: {}]   ;;  %s4772_s6 = inlined_call_operand.vmem [shape: f32[4,32,8], index: 6, kind: input, shape index: {}]   ;;  %s4773_s7 = inlined_call_operand.vmem [shape: f32[4,1,8], index: 7, kind: input, shape index: {}]   ;;  %s4774_s8 = inlined_call_operand.vmem [shape: f32[4,32,8], index: 8, kind: input, shape index: {}]   ;;  %s4775_s9 = inlined_call_operand.vmem [shape: f32[4,1,8], index: 9, kind: input, shape index: {}]   ;;  %s4776_s10 = inlined_call_operand.vmem [shape: f32[4,8,32], index: 10, kind: input, shape index: {}]   ;;  %s4777_s11 = inlined_call_operand.vmem [shape: f32[1,32], index: 11, kind: input, shape index: {}]   ;;  %s4778_s12 = inlined_call_operand.vmem [shape: f32[2,8,32], index: 12, kind: output, shape index: {}]  }
   0x1   :  { %4779 = sst [smem:[#allocation3_spill]] %s4766_s0  ;;  %s4398_s23 = smov 0  }
   0x2   :  { %4780 = sst [smem:[#allocation4_spill]] %s4778_s12  ;;  %s4400_s24 = smov 0  }
   0x3   :  { %s4402_s25 = smov 0  }
   0x4 LB: > { %s31_s26 = sadd.s32 1, %s4314_s23  ;;  %s34_s27 = sadd.s32 1, %s4318_s24  ;;  %s4322_s25 = sphi %s4402_s25, %s22_s25   ;;  %s4318_s24 = sphi %s4400_s24, %s4786_s24   ;;  %s4314_s23 = sphi %s4398_s23, %s4785_s23   ;;  %s4310_s22 = sphi %s4396_s22, %s4784_s22   ;;  %s4306_s21 = sphi %s4394_s21, %s4783_s21  }
   0x5   : > { %p32_p0 = scmp.ge.s32.totalorder %s31_s26, 4  ;;  %p3633_p1 = scmp.ge.s32.totalorder %s4322_s25, 1 }
   0x6   : > { %p444_p2 = scmp.lt.s32.totalorder %s4322_s25, 9 }
   0x7   : > { %s4788_s26 = smov (%p32_p0, %s31_s26), 0  ;;  %s4790_s27 = smov (!%p32_p0, %s34_s27), %s4318_s24 }
   0x8   : > { %p445_p3 = pnand %p3633_p1, %p444_p2  ;;  %p36_p4 = scmp.ge.s32.totalorder %s4790_s27, 2 }
   0x9   : > { %p515_p5 = scmp.lt.s32.totalorder (!%p445_p3), %s4310_s22, 1  ;;  %vm557_vm0 = vcmask (!%p445_p3), 261120   ;;  %s4781_s0 = sld [smem:[#allocation3_spill]] (!%p445_p3)  ;;  %v4324_v7 = vmov (!%p445_p3), 0.0|0.0   ;;  %vm4325_vm1 = vmmov (!%p445_p3), 0   ;;  %v4326_v8 = vmov (!%p445_p3), 0.0  }
   0xa   : > { %s4792_s27 = smov (%p36_p4, %s4790_s27), 0  ;;  %448 = sbr.rel (%p445_p3) target bundleno = 1706 (0x6aa), region = 68 }
   0xb   : > { %s4782_s12 = sld [smem:[#allocation4_spill]] (!%p445_p3)  ;;  %p522_p6 = scmp.lt.s32.totalorder (!%p445_p3), %s4306_s21, 3  ;;  %4070 = vmatprep.subr.bf16.mxu0 (!%p445_p3), %v4324_v7  ;;  %4106 = vmatprep.subr.bf16.mxu1 (!%p445_p3), %v4324_v7  ;;  %vm2085_vm4 = vcmask (!%p445_p3), 64512  }
   0xc   : > { %3790 = vmatprep.mubr.msk.f32.mxu0 (!%p445_p3), %vm4325_vm1, %v4326_v8  ;;  %3856 = vmatprep.mubr.msk.f32.mxu1 (!%p445_p3), %vm4325_vm1, %v4326_v8  ;;  %p3648_p7 = scmp.ne.s32.totalorder (!%p445_p3), %s4306_s21, 0 }
  0x11   : > { %s4794_s22 = smov (!%p515_p5, %s4310_s22), 1 }
  0x12   : > { %s3634_s28 = sshll.u32 %s4794_s22, 3 }
  0x13   : > { %s518_s13 = scalar_lea.vmem %s4781_s0, %s3634_s28  ;;  %s4435_s16 = scalar_lea.vmem %s4782_s12, %s3634_s28 }
  0x14   : > { %v4437_v0 = vld [vmem:[%s518_s13] sm:$0xff]  ;;  %s4451_s17 = scalar_select %p522_p6, %s4306_s21, 3 }
  0x15   : > { %v558_v1 = vsel %vm557_vm0, %v4437_v0, 0.0 }
  0x16   : > { %559 = vadd.xlane.f32.xlu0 %v558_v1  ;;  %s4458_s18 = sshll.u32 %s4451_s17, 5  ;;  %s3641_s19 = sshll.u32 %s4451_s17, 3 }
  0x17   : > { %s526_s29 = scalar_lea.vmem %s4770_s4, %s4458_s18  ;;  %s4468_s14 = scalar_lea.vmem %s4776_s10, %s3641_s19 }
  0x18   : > { %v594_v9 = vld [vmem:[%s526_s29] sm:$0xff]  ;;  %v595_v10 = vld [vmem:[%s526_s29 + $0x8] sm:$0xff]  ;;  %s534_s12 = scalar_lea.vmem %s4772_s6, %s4458_s18  ;;  %v596_v11 = vld [vmem:[%s526_s29 + $0x10] sm:$0xff]  ;;  %s542_s30 = scalar_lea.vmem %s4774_s8, %s4458_s18 }
  0x19   : > { %v609_v12 = vand.u32 4294901760, %v594_v9  ;;  %v612_v13 = vand.u32 4294901760, %v595_v10  ;;  %v1093_v14 = vld [vmem:[%s534_s12] sm:$0xff]  ;;  %v1094_v15 = vld [vmem:[%s534_s12 + $0x8] sm:$0xff]  ;;  %v597_v16 = vld [vmem:[%s526_s29 + $0x18] sm:$0xff]  ;;  %v615_v17 = vand.u32 4294901760, %v596_v11  ;;  %s529_s15 = scalar_lea.vmem %s4771_s5, %s4451_s17  ;;  %s537_s19 = scalar_lea.vmem %s4773_s7, %s4451_s17 }
  0x1a   : > { %v1105_v18 = vand.u32 4294901760, %v1093_v14  ;;  %v1108_v19 = vand.u32 4294901760, %v1094_v15  ;;  %v618_v20 = vand.u32 4294901760, %v597_v16  ;;  %v1095_v21 = vld [vmem:[%s534_s12 + $0x10] sm:$0xff]  ;;  %v1096_v22 = vld [vmem:[%s534_s12 + $0x18] sm:$0xff]  ;;  %s545_s29 = scalar_lea.vmem %s4775_s9, %s4451_s17  ;;  %s521_s18 = scalar_lea.vmem %s4767_s1, %s4794_s22 }
  0x1b   : > { %v4474_v23 = vpack.c.bf16 %v612_v13, %v609_v12  ;;  %v4476_v24 = vsub.f32 %v594_v9, %v609_v12  ;;  %v4478_v25 = vsub.f32 %v595_v10, %v612_v13  ;;  %v4480_v26 = vsub.f32 %v596_v11, %v615_v17 }
  0x1c   : > { %v4482_v27 = vpack.c.bf16 %v1108_v19, %v1105_v18  ;;  %v4484_v28 = vsub.f32 %v1093_v14, %v1105_v18  ;;  %v4486_v29 = vsub.f32 %v1094_v15, %v1108_v19  ;;  %v4489_v30 = vpack.c.bf16 %v618_v20, %v615_v17 }
  0x1d   : > { %4072 = vmatpush3.bf16.msra.mxu0 %v4474_v23  ;;  %v4491_v31 = vsub.f32 %v597_v16, %v618_v20  ;;  %v1111_v32 = vand.u32 4294901760, %v1095_v21  ;;  %v1114_v33 = vand.u32 4294901760, %v1096_v22  ;;  %v690_v37 = vand.u32 4294901760, %v4476_v24 }
  0x1e   : > { %4108 = vmatpush3.bf16.msra.mxu1 %v4482_v27  ;;  %4073 = vmatprep.subr.bf16.mxu0 %v4324_v7  ;;  %v697_v38 = vand.u32 4294901760, %v4478_v25  ;;  %v1186_v41 = vand.u32 4294901760, %v4484_v28  ;;  %v1193_v42 = vand.u32 4294901760, %v4486_v29  ;;  %v704_v47 = vand.u32 4294901760, %v4480_v26 }
  0x1f   : > { %4109 = vmatprep.subr.bf16.mxu1 %v4324_v7  ;;  %v4496_v34 = vpack.c.bf16 %v1114_v33, %v1111_v32  ;;  %v4498_v35 = vsub.f32 %v1095_v21, %v1111_v32  ;;  %v4500_v36 = vsub.f32 %v1096_v22, %v1114_v33  ;;  %v691_v39 = vsub.f32 %v4476_v24, %v690_v37  ;;  %v3643_v21 = vld [vmem:[%s4768_s2] ss:$0 sm:$0xff] }
  0x20   : > { %v698_v40 = vsub.f32 %v4478_v25, %v697_v38  ;;  %v1187_v45 = vsub.f32 %v4484_v28, %v1186_v41  ;;  %v1194_v46 = vsub.f32 %v4486_v29, %v1193_v42  ;;  %v711_v48 = vand.u32 4294901760, %v4491_v31 }
  0x21   : > { %4075 = vmatpush3.bf16.msra.mxu0 %v4489_v30  ;;  %v692_v43 = vand.u32 4294901760, %v691_v39  ;;  %v1200_v52 = vand.u32 4294901760, %v4498_v35  ;;  %v705_v53 = vsub.f32 %v4480_v26, %v704_v47  ;;  %v1207_v55 = vand.u32 4294901760, %v4500_v36 }
  0x22   : > { %4111 = vmatpush3.bf16.msra.mxu1 %v4496_v34  ;;  %4076 = vmatprep.subr.bf16.mxu0 %v4324_v7  ;;  %v699_v44 = vand.u32 4294901760, %v698_v40  ;;  %v1188_v50 = vand.u32 4294901760, %v1187_v45  ;;  %v1195_v51 = vand.u32 4294901760, %v1194_v46  ;;  %v712_v54 = vsub.f32 %v4491_v31, %v711_v48  ;;  %v1591_v40 = vld [vmem:[%s542_s30 + $0x10] sm:$0xff] }
  0x23   : > { %4112 = vmatprep.subr.bf16.mxu1 %v4324_v7  ;;  %v1201_v57 = vsub.f32 %v4498_v35, %v1200_v52  ;;  %v706_v58 = vand.u32 4294901760, %v705_v53  ;;  %v1208_v60 = vsub.f32 %v4500_v36, %v1207_v55  ;;  %v4530_v9 = vpack.c.bf16 %v697_v38, %v690_v37  ;;  %v1590_v37 = vld [vmem:[%s542_s30 + $0x8] sm:$0xff] }
  0x24   : > { %v4077_v49 = vpack.c.bf16 %v699_v44, %v692_v43  ;;  %v4113_v56 = vpack.c.bf16 %v1195_v51, %v1188_v50  ;;  %v713_v59 = vand.u32 4294901760, %v712_v54  ;;  %v4532_v10 = vpack.c.bf16 %v1193_v42, %v1186_v41  ;;  %v1592_v41 = vld [vmem:[%s542_s30 + $0x18] sm:$0xff] }
  0x25   : > { %v1202_v61 = vand.u32 4294901760, %v1201_v57  ;;  %v1209_v63 = vand.u32 4294901760, %v1208_v60  ;;  %v4534_v11 = vpack.c.bf16 %v711_v48, %v704_v47  ;;  %v4536_v12 = vpack.c.bf16 %v1207_v55, %v1200_v52 }
  0x26   : > { %v4080_v62 = vpack.c.bf16 %v713_v59, %v706_v58  ;;  %v1604_v39 = vand.u32 4294901760, %v1590_v37  ;;  %v1607_v44 = vand.u32 4294901760, %v1591_v40  ;;  %v1610_v45 = vand.u32 4294901760, %v1592_v41 }
  0x27   : > { %v4116_v1 = vpack.c.bf16 %v1209_v63, %v1202_v61 }
  0x28   : > { %v4610_v43 = vsub.f32 %v1590_v37, %v1604_v39  ;;  %v1695_v46 = vsub.f32 %v1591_v40, %v1607_v44  ;;  %v1702_v47 = vsub.f32 %v1592_v41, %v1610_v45  ;;  %v4146_v53 = vpack.c.bf16 %v1610_v45, %v1607_v44 }
  0x2a   : > { %v1696_v51 = vand.u32 4294901760, %v1695_v46  ;;  %v1703_v52 = vand.u32 4294901760, %v1702_v47  ;;  %v4158_v61 = vpack.c.bf16 %v1702_v47, %v1695_v46 }
  0x2c   : > { %v1697_v54 = vsub.f32 %v1695_v46, %v1696_v51  ;;  %v1704_v55 = vsub.f32 %v1702_v47, %v1703_v52  ;;  %v4170_v63 = vpack.c.bf16 %v1703_v52, %v1696_v51 }
  0x2e   : > { %v1698_v57 = vand.u32 4294901760, %v1697_v54  ;;  %v1705_v58 = vand.u32 4294901760, %v1704_v55 }
  0x30   : > { %v4152_v59 = vpack.c.bf16 %v1705_v58, %v1698_v57 }
  0xa3   : > { %v560_v2 = vpop.xlane.xlu0 %559 }
  0xa4   : > { %v562_v3 = vmul.f32 0.03125, %v560_v2  ;;  %v4083_v2 = vpack.c.bf16 %v4478_v25, %v4476_v24  ;;  %v3644_v25 = vld [vmem:[%s4769_s3] ss:$0 sm:$0xff] }
  0xa6   : > { %v4442_v4 = vsub.f32 %v4437_v0, %v562_v3  ;;  %v4119_v3 = vpack.c.bf16 %v4486_v29, %v4484_v28 }
  0xa8   : > { %v564_v5 = vmul.f32 %v4442_v4, %v4442_v4  ;;  %v583_v22 = vmul.f32 %v3643_v21, %v4442_v4 }
  0xaa   : > { %v565_v6 = vsel %vm557_vm0, %v564_v5, 0.0  ;;  %v4086_v5 = vpack.c.bf16 %v4491_v31, %v4480_v26 }
  0xab   : > { %566 = vadd.xlane.f32.xlu0 %v565_v6  ;;  %v4122_v6 = vpack.c.bf16 %v4500_v36, %v4498_v35  ;;  %v1589_v36 = vld [vmem:[%s542_s30] sm:$0xff] }
  0xac   : > { %v1601_v38 = vand.u32 4294901760, %v1589_v36 }
  0xae   : > { %v4608_v42 = vsub.f32 %v1589_v36, %v1601_v38  ;;  %v4143_v50 = vpack.c.bf16 %v1604_v39, %v1601_v38 }
  0xb0   : > { %v1682_v48 = vand.u32 4294901760, %v4608_v42  ;;  %v4155_v60 = vpack.c.bf16 %v4610_v43, %v4608_v42 }
 0x138   : > { %v567_v13 = vpop.xlane.xlu0 %566 }
 0x139   : > { %v569_v14 = vmul.f32 0.032258064, %v567_v13 }
 0x13b   : > { %4276 = vrsqrt.f32 %v569_v14  ;;  %vm572_vm2 = vcmp.eq.f32.partialorder %v569_v14, inf  ;;  %v575_v17 = vand.u32 2147483648, %v569_v14  ;;  %vm574_vm3 = vcmp.eq.f32.partialorder %v569_v14, 0.0 }
 0x145   : > { %v4277_v15 = vpop.eup %4276 }
 0x146   : > { %v571_v16 = vmul.f32 %v4277_v15, %v569_v14 }
 0x148   : > { %v573_v18 = vsel %vm572_vm2, %v569_v14, %v571_v16 }
 0x149   : > { %v576_v19 = vsel %vm574_vm3, %v575_v17, %v573_v18 }
 0x14a   : > { %v584_v20 = vadd.f32 1e-06, %v576_v19 }
 0x14c   : > { %4278 = vrcp.f32 %v584_v20 }
 0x156   : > { %v4279_v24 = vpop.eup %4278 }
 0x157   : > { %v586_v26 = vmul.f32 %v4279_v24, %v583_v22  ;;  %v3647_v24 = vld [vmem:[%s545_s29] ss:$0 sm:$0xff] }
 0x159   : > { %v593_v28 = vadd.f32 %v3644_v25, %v586_v26 }
 0x15b   : > { %v606_v29 = vsel %vm557_vm0, %v593_v28, 0 }
 0x15c   : > { %v4546_v31 = vand.u32 4294901760, %v606_v29 }
 0x15e   : > { %v4549_v32 = vsub.f32 %v606_v29, %v4546_v31 }
 0x160   : > { %v4552_v33 = vand.u32 4294901760, %v4549_v32 }
 0x162   : > { %v680_v4 = vsub.f32 %v4549_v32, %v4552_v33 }
 0x164   : > { %v4556_v35 = vand.u32 4294901760, %v680_v4 }
 0x166   : > { %3791 = vmatmul.mubr.f32.vlgmr.msra.gmra.mrb[0].mxu0 %v4556_v35  ;;  %3857 = vmatmul.mubr.f32.vlgmr.msra.gmra.mrb[0].mxu1 %v4556_v35 }
 0x167   : > { %4078 = vmatpush3.bf16.msra.mxu0 %v4077_v49  ;;  %4114 = vmatpush3.bf16.msra.mxu1 %v4113_v56  ;;  %v1689_v49 = vand.u32 4294901760, %v4610_v43 }
 0x168   : > { %4079 = vmatprep.subr.bf16.mxu0 %v4324_v7  ;;  %4115 = vmatprep.subr.bf16.mxu1 %v4324_v7 }
 0x169   : > { %3801 = vmatprep.mubr.msk.f32.mxu0 %vm4325_vm1, %v4326_v8  ;;  %3867 = vmatprep.mubr.msk.f32.mxu1 %vm4325_vm1, %v4326_v8 }
 0x16b   : > { %4081 = vmatpush3.bf16.msra.mxu0 %v4080_v62  ;;  %4117 = vmatpush3.bf16.msra.mxu1 %v4116_v1  ;;  %v4167_v62 = vpack.c.bf16 %v1689_v49, %v1682_v48  ;;  %v3645_v1 = vld [vmem:[%s529_s15] ss:$0 sm:$0xff] }
 0x16c   : > { %4082 = vmatprep.subr.bf16.mxu0 %v4324_v7  ;;  %4118 = vmatprep.subr.bf16.mxu1 %v4324_v7 }
 0x16e   : > { %3802 = vmatmul.mubr.f32.vlgmr.msra.gmra.mrb[0].mxu0 %v4546_v31  ;;  %3868 = vmatmul.mubr.f32.vlgmr.msra.gmra.mrb[0].mxu1 %v4546_v31 }
 0x16f   : > { %4084 = vmatpush3.bf16.msra.mxu0 %v4083_v2  ;;  %4120 = vmatpush3.bf16.msra.mxu1 %v4119_v3  ;;  %v3646_v2 = vld [vmem:[%s537_s19] ss:$0 sm:$0xff] }
 0x170   : > { %4085 = vmatprep.subr.bf16.mxu0 %v4324_v7  ;;  %4121 = vmatprep.subr.bf16.mxu1 %v4324_v7 }
 0x171   : > { %3812 = vmatprep.mubr.msk.f32.mxu0 %vm4325_vm1, %v4326_v8  ;;  %3878 = vmatprep.mubr.msk.f32.mxu1 %vm4325_vm1, %v4326_v8 }
 0x173   : > { %4087 = vmatpush3.bf16.msra.mxu0 %v4086_v5  ;;  %4123 = vmatpush3.bf16.msra.mxu1 %v4122_v6 }
 0x174   : > { %4088 = vmatprep.subr.bf16.mxu0 %v4324_v7  ;;  %4124 = vmatprep.subr.bf16.mxu1 %v4324_v7 }
 0x176   : > { %3813 = vmatmul.mubr.f32.vlgmr.msra.gmra.mrb[0].mxu0 %v4549_v32  ;;  %3879 = vmatmul.mubr.f32.vlgmr.msra.gmra.mrb[0].mxu1 %v4549_v32 }
 0x177   : > { %4090 = vmatpush3.bf16.msra.mxu0 %v4474_v23  ;;  %4126 = vmatpush3.bf16.msra.mxu1 %v4482_v27 }
 0x178   : > { %4091 = vmatprep.subr.bf16.mxu0 %v4324_v7  ;;  %4127 = vmatprep.subr.bf16.mxu1 %v4324_v7 }
 0x179   : > { %3823 = vmatprep.mubr.msk.f32.mxu0 %vm4325_vm1, %v4326_v8  ;;  %3889 = vmatprep.mubr.msk.f32.mxu1 %vm4325_vm1, %v4326_v8 }
 0x17b   : > { %4093 = vmatpush3.bf16.msra.mxu0 %v4489_v30  ;;  %4129 = vmatpush3.bf16.msra.mxu1 %v4496_v34 }
 0x17c   : > { %4094 = vmatprep.subr.bf16.mxu0 %v4324_v7  ;;  %4130 = vmatprep.subr.bf16.mxu1 %v4324_v7 }
 0x17e   : > { %3824 = vmatmul.mubr.f32.vlgmr.msra.gmra.mrb[0].mxu0 %v4552_v33  ;;  %3890 = vmatmul.mubr.f32.vlgmr.msra.gmra.mrb[0].mxu1 %v4552_v33 }
 0x17f   : > { %4096 = vmatpush3.bf16.msra.mxu0 %v4530_v9  ;;  %4132 = vmatpush3.bf16.msra.mxu1 %v4532_v10 }
 0x180   : > { %4097 = vmatprep.subr.bf16.mxu0 %v4324_v7  ;;  %4133 = vmatprep.subr.bf16.mxu1 %v4324_v7 }
 0x181   : > { %3834 = vmatprep.mubr.msk.f32.mxu0 %vm4325_vm1, %v4326_v8  ;;  %3900 = vmatprep.mubr.msk.f32.mxu1 %vm4325_vm1, %v4326_v8 }
 0x183   : > { %4099 = vmatpush3.bf16.msra.mxu0 %v4534_v11  ;;  %4135 = vmatpush3.bf16.msra.mxu1 %v4536_v12 }
 0x184   : > { %4100 = vmatprep.subr.bf16.mxu0 %v4324_v7  ;;  %4136 = vmatprep.subr.bf16.mxu1 %v4324_v7 }
 0x186   : > { %3835 = vmatmul.mubr.f32.vlgmr.msra.gmra.mrb[0].mxu0 %v4546_v31  ;;  %3901 = vmatmul.mubr.f32.vlgmr.msra.gmra.mrb[0].mxu1 %v4546_v31 }
 0x187   : > { %4102 = vmatpush3.bf16.msra.mxu0 %v4474_v23  ;;  %4138 = vmatpush3.bf16.msra.mxu1 %v4482_v27  ;;  %v1683_v23 = vsub.f32 %v4608_v42, %v1682_v48  ;;  %v1690_v27 = vsub.f32 %v4610_v43, %v1689_v49 }
 0x188   : > { %4103 = vmatprep.subr.bf16.mxu0 %v4324_v7  ;;  %4139 = vmatprep.subr.bf16.mxu1 %v4324_v7 }
 0x189   : > { %3845 = vmatprep.mubr.msk.f32.mxu0 %vm4325_vm1, %v4326_v8  ;;  %3911 = vmatprep.mubr.msk.f32.mxu1 %vm4325_vm1, %v4326_v8 }
 0x18b   : > { %4105 = vmatpush3.bf16.msra.mxu0 %v4489_v30  ;;  %4141 = vmatpush3.bf16.msra.mxu1 %v4496_v34  ;;  %v1684_v30 = vand.u32 4294901760, %v1683_v23  ;;  %v1691_v34 = vand.u32 4294901760, %v1690_v27 }
 0x18c   : > { %4142 = vmatprep.subr.bf16.mxu0 %v4324_v7  ;;  %3980 = vmatprep.subr.mxu1 %v4326_v8 }
 0x18d   : > { %v4149_v56 = vpack.c.bf16 %v1691_v34, %v1684_v30 }
 0x18e   : > { %3846 = vmatmul.mubr.f32.vlgmr.msra.gmra.mrb[0].mxu0 %v4546_v31  ;;  %3912 = vmatmul.mubr.f32.vlgmr.msra.gmra.mrb[0].mxu1 %v4546_v31 }
 0x18f   : > { %4144 = vmatpush3.bf16.msra.mxu0 %v4143_v50  ;;  %3922 = vmatprep.mubr.msk.f32.mxu0 %vm4325_vm1, %v4326_v8 }
 0x190   : > { %4145 = vmatprep.subr.bf16.mxu0 %v4324_v7  ;;  %3982 = vmatprep.mubr.msk.f32.mxu1 %vm4325_vm1, %v4326_v8 }
 0x193   : > { %4147 = vmatpush3.bf16.msra.mxu0 %v4146_v53 }
 0x194   : > { %4148 = vmatprep.subr.bf16.mxu0 %v4324_v7 }
 0x196   : > { %3923 = vmatmul.mubr.f32.vlgmr.msra.gmra.mrb[2].mxu0 %v4556_v35  ;;  %v4327_v35 = vmov 0  }
 0x197   : > { %4150 = vmatpush3.bf16.msra.mxu0 %v4149_v56  ;;  %3933 = vmatprep.mubr.msk.f32.mxu0 %vm4325_vm1, %v4326_v8 }
 0x198   : > { %4151 = vmatprep.subr.bf16.mxu0 %v4324_v7 }
 0x19b   : > { %4153 = vmatpush3.bf16.msra.mxu0 %v4152_v59  ;;  %v4328_v59 = vmov (!%p3648_p7), 0.0  }
 0x19c   : > { %4154 = vmatprep.subr.bf16.mxu0 %v4324_v7  ;;  %3012 = vst.msk [vmem:[#allocation2] sm:$0xff] (!%p3648_p7), %vm557_vm0, %v4328_v59 }
 0x19e   : > { %3934 = vmatmul.mubr.f32.vlgmr.msra.gmra.mrb[2].mxu0 %v4546_v31 }
 0x19f   : > { %4156 = vmatpush3.bf16.msra.mxu0 %v4155_v60  ;;  %3944 = vmatprep.mubr.msk.f32.mxu0 %vm4325_vm1, %v4326_v8 }
 0x1a0   : > { %4157 = vmatprep.subr.bf16.mxu0 %v4324_v7 }
 0x1a3   : > { %4159 = vmatpush3.bf16.msra.mxu0 %v4158_v61 }
 0x1a4   : > { %4160 = vmatprep.subr.bf16.mxu0 %v4324_v7 }
 0x1a6   : > { %3945 = vmatmul.mubr.f32.vlgmr.msra.gmra.mrb[2].mxu0 %v4549_v32  ;;  %v2539_v32 = vld [vmem:[%s521_s18] sm:$0x1] }
 0x1a7   : > { %4162 = vmatpush3.bf16.msra.mxu0 %v4143_v50  ;;  %3955 = vmatprep.mubr.msk.f32.mxu0 %vm4325_vm1, %v4326_v8  ;;  %vm2540_vm5 = vcmp.eq.f32.partialorder %v2539_v32, 0.0 }
 0x1a8   : > { %4163 = vmatprep.subr.bf16.mxu0 %v4324_v7  ;;  %v2541_v36 = vsel %vm2540_vm5, 1, %v4327_v35 }
 0x1ab   : > { %4165 = vmatpush3.bf16.msra.mxu0 %v4146_v53 }
 0x1ac   : > { %4166 = vmatprep.subr.bf16.mxu0 %v4324_v7 }
 0x1ae   : > { %3956 = vmatmul.mubr.f32.vlgmr.msra.gmra.mrb[2].mxu0 %v4552_v33 }
 0x1af   : > { %4168 = vmatpush3.bf16.msra.mxu0 %v4167_v62  ;;  %3966 = vmatprep.mubr.msk.f32.mxu0 %vm4325_vm1, %v4326_v8 }
 0x1b0   : > { %4169 = vmatprep.subr.bf16.mxu0 %v4324_v7 }
 0x1b3   : > { %4171 = vmatpush3.bf16.msra.mxu0 %v4170_v63 }
 0x1b4   : > { %4172 = vmatprep.subr.bf16.mxu0 %v4324_v7 }
 0x1b6   : > { %3967 = vmatmul.mubr.f32.vlgmr.msra.gmra.mrb[2].mxu0 %v4546_v31 }
 0x1b7   : > { %4174 = vmatpush3.bf16.msra.mxu0 %v4143_v50  ;;  %3977 = vmatprep.mubr.msk.f32.mxu0 %vm4325_vm1, %v4326_v8 }
 0x1b8   : > { %4175 = vmatprep.subr.bf16.mxu0 %v4324_v7 }
 0x1bb   : > { %4177 = vmatpush3.bf16.msra.mxu0 %v4146_v53 }
 0x1be   : > { %3978 = vmatmul.mubr.f32.vlgmr.msra.gmra.mrb[2].mxu0 %v4546_v31  ;;  %v2542_v31 = vlaneseq }
 0x1c0   : > { %v2543_v33 = vshrl.u32 %v2542_v31, 7 }
 0x1c2   : > { %v2544_v4 = vsub.s32 0, %v2543_v33 }
 0x1c4   : > { %v2545_v37 = vrot.slane %v2541_v36, %v2544_v4 }
 0x1c6   : > { %vm2546_vm6 = vcmp.eq.s32.totalorder %v2545_v37, 1 }
 0x261   : > { %v1089_v3 = vpop.f32.mrb[0].mxu0  ;;  %v1585_v5 = vpop.f32.mrb[0].mxu1 }
 0x262   : > { %v4178_v6 = vadd.f32 %v3645_v1, %v1089_v3  ;;  %v4179_v9 = vadd.f32 %v3646_v2, %v1585_v5  ;;  %v3847_v10 = vpop.f32.mrb[1].mxu0  ;;  %v3913_v7 = vpop.f32.mrb[1].mxu1 }
 0x264   : > { %v2087_v11 = vsel %vm2085_vm4, %v4178_v6, 0  ;;  %v2090_v12 = vsel %vm2085_vm4, %v4179_v9, 0 }
 0x265   : > { %v2158_v13 = vand.u32 4294901760, %v2087_v11  ;;  %v2093_v14 = vand.u32 4294901760, %v2090_v12 }
 0x267   : > { %v2159_v15 = vsub.f32 %v2087_v11, %v2158_v13  ;;  %v2170_v16 = vsub.f32 %v2090_v12, %v2093_v14  ;;  %3981 = vmatpush3.xpose.msra.mxu1 %v2093_v14 }
 0x268   : > { %3985 = vmatprep.subr.mxu1 %v4326_v8 }
 0x269   : > { %v2160_v17 = vand.u32 4294901760, %v2159_v15  ;;  %v2171_v18 = vand.u32 4294901760, %v2170_v16 }
 0x26b   : > { %v2161_v19 = vsub.f32 %v2159_v15, %v2160_v17  ;;  %v2172_v20 = vsub.f32 %v2170_v16, %v2171_v18 }
 0x26d   : > { %v2162_v21 = vand.u32 4294901760, %v2161_v19  ;;  %v2173_v22 = vand.u32 4294901760, %v2172_v20 }
 0x26f   : > { %3983 = vmatmul.mubr.f32.vlgmr.msra.gmra.mrb[2].mxu1 %v2162_v21 }
 0x270   : > { %3986 = vmatpush3.xpose.msra.mxu1 %v2173_v22  ;;  %3987 = vmatprep.mubr.msk.f32.mxu1 %vm4325_vm1, %v4326_v8 }
 0x271   : > { %3990 = vmatprep.subr.mxu1 %v4326_v8 }
 0x277   : > { %3988 = vmatmul.mubr.f32.vlgmr.msra.gmra.mrb[2].mxu1 %v2158_v13 }
 0x278   : > { %3991 = vmatpush3.xpose.msra.mxu1 %v2170_v16  ;;  %3992 = vmatprep.mubr.msk.f32.mxu1 %vm4325_vm1, %v4326_v8 }
 0x279   : > { %3995 = vmatprep.subr.mxu1 %v4326_v8 }
 0x27f   : > { %3993 = vmatmul.mubr.f32.vlgmr.msra.gmra.mrb[2].mxu1 %v2159_v15 }
 0x280   : > { %3996 = vmatpush3.xpose.msra.mxu1 %v2093_v14  ;;  %3997 = vmatprep.mubr.msk.f32.mxu1 %vm4325_vm1, %v4326_v8 }
 0x281   : > { %4000 = vmatprep.subr.mxu1 %v4326_v8 }
 0x287   : > { %3998 = vmatmul.mubr.f32.vlgmr.msra.gmra.mrb[2].mxu1 %v2160_v17 }
 0x288   : > { %4001 = vmatpush3.xpose.msra.mxu1 %v2171_v18  ;;  %4002 = vmatprep.mubr.msk.f32.mxu1 %vm4325_vm1, %v4326_v8 }
 0x289   : > { %4005 = vmatprep.subr.mxu1 %v4326_v8 }
 0x28f   : > { %4003 = vmatmul.mubr.f32.vlgmr.msra.gmra.mrb[2].mxu1 %v2158_v13 }
 0x290   : > { %4006 = vmatpush3.xpose.msra.mxu1 %v2093_v14  ;;  %4007 = vmatprep.mubr.msk.f32.mxu1 %vm4325_vm1, %v4326_v8 }
 0x291   : > { %v2081_v25 = vpop.f32.mrb[2].mxu0  ;;  %4010 = vmatprep.subr.mxu1 %v4326_v8 }
 0x292   : > { %v4180_v26 = vadd.f32 %v3647_v24, %v2081_v25  ;;  %v3979_v28 = vpop.f32.mrb[3].mxu0 }
 0x294   : > { %v2563_v29 = vand.u32 4294901760, %v4180_v26 }
 0x296   : > { %v2640_v50 = vsub.f32 %v4180_v26, %v2563_v29 }
 0x297   : > { %4008 = vmatmul.mubr.f32.vlgmr.msra.gmra.mrb[2].mxu1 %v2158_v13 }
 0x298   : > { %4011 = vmatpush3.msra.mxu1 %v2563_v29  ;;  %4012 = vmatprep.mubr.msk.f32.mxu1 %vm4325_vm1, %v4326_v8  ;;  %v2641_v52 = vand.u32 4294901760, %v2640_v50 }
 0x299   : > { %4015 = vmatprep.subr.mxu1 %v4326_v8 }
 0x29a   : > { %v2642_v34 = vsub.f32 %v2640_v50, %v2641_v52 }
 0x29c   : > { %v2643_v56 = vand.u32 4294901760, %v2642_v34 }
 0x36a   : > { %v2534_v38 = vpop.f32.mrb[2].mxu1 }
 0x36b   : > { %v2538_v39 = vmul.f32 0.35355338, %v2534_v38  ;;  %v4009_v40 = vpop.f32.mrb[3].mxu1 }
 0x36d   : > { %v2547_v41 = vsel %vm2546_vm6, -1e+09, %v2538_v39 }
 0x36e   : > { %v2548_v42 = vsel %vm2085_vm4, %v2547_v41, -inf }
 0x36f   : > { %2549 = vmax.xlane.f32.xlu1 %v2548_v42 }
 0x3fc   : > { %v2550_v43 = vpop.xlane.xlu1 %2549 }
 0x3fd   : > { %v2551_v44 = vsub.f32 %v2547_v41, %v2550_v43 }
 0x3ff   : > { %v2552_v45 = vmul.f32 1.442695, %v2551_v44 }
 0x401   : > { %4280 = vpow2.f32 %v2552_v45 }
 0x40b   : > { %v4281_v46 = vpop.eup %4280 }
 0x40c   : > { %v2554_v47 = vsel %vm2085_vm4, %v4281_v46, 0.0 }
 0x40d   : > { %2555 = vadd.xlane.f32.xlu1 %v2554_v47 }
 0x49a   : > { %v2556_v48 = vpop.xlane.xlu1 %2555 }
 0x49b   : > { %4282 = vrcp.f32 %v2556_v48 }
 0x4a5   : > { %v4283_v49 = vpop.eup %4282 }
 0x4a6   : > { %v2558_v23 = vmul.f32 %v4283_v49, %v4281_v46 }
 0x4a8   : > { %v2560_v27 = vsel %vm2085_vm4, %v2558_v23, 0 }
 0x4a9   : > { %v2628_v51 = vand.u32 4294901760, %v2560_v27 }
 0x4ab   : > { %v2629_v53 = vsub.f32 %v2560_v27, %v2628_v51 }
 0x4ad   : > { %v2630_v30 = vand.u32 4294901760, %v2629_v53 }
 0x4af   : > { %v2631_v54 = vsub.f32 %v2629_v53, %v2630_v30 }
 0x4b1   : > { %v2632_v55 = vand.u32 4294901760, %v2631_v54 }
 0x4b3   : > { %4013 = vmatmul.mubr.f32.vlgmr.msra.gmra.mrb[4].mxu1 %v2632_v55 }
 0x4b4   : > { %4016 = vmatpush3.msra.mxu1 %v2643_v56  ;;  %4017 = vmatprep.mubr.msk.f32.mxu1 %vm4325_vm1, %v4326_v8 }
 0x4b5   : > { %4020 = vmatprep.subr.mxu1 %v4326_v8 }
 0x4bb   : > { %4018 = vmatmul.mubr.f32.vlgmr.msra.gmra.mrb[4].mxu1 %v2628_v51 }
 0x4bc   : > { %4021 = vmatpush3.msra.mxu1 %v2640_v50  ;;  %4022 = vmatprep.mubr.msk.f32.mxu1 %vm4325_vm1, %v4326_v8 }
 0x4bd   : > { %4025 = vmatprep.subr.mxu1 %v4326_v8 }
 0x4c3   : > { %4023 = vmatmul.mubr.f32.vlgmr.msra.gmra.mrb[4].mxu1 %v2629_v53 }
 0x4c4   : > { %4026 = vmatpush3.msra.mxu1 %v2563_v29  ;;  %4027 = vmatprep.mubr.msk.f32.mxu1 %vm4325_vm1, %v4326_v8 }
 0x4c5   : > { %4030 = vmatprep.subr.mxu1 %v4326_v8 }
 0x4cb   : > { %4028 = vmatmul.mubr.f32.vlgmr.msra.gmra.mrb[4].mxu1 %v2630_v30 }
 0x4cc   : > { %4031 = vmatpush3.msra.mxu1 %v2641_v52  ;;  %4032 = vmatprep.mubr.msk.f32.mxu1 %vm4325_vm1, %v4326_v8 }
 0x4cd   : > { %4035 = vmatprep.subr.mxu1 %v4326_v8 }
 0x4d3   : > { %4033 = vmatmul.mubr.f32.vlgmr.msra.gmra.mrb[4].mxu1 %v2628_v51 }
 0x4d4   : > { %4036 = vmatpush3.msra.mxu1 %v2563_v29  ;;  %4037 = vmatprep.mubr.msk.f32.mxu1 %vm4325_vm1, %v4326_v8 }
 0x4db   : > { %4038 = vmatmul.mubr.f32.vlgmr.msra.gmra.mrb[4].mxu1 %v2628_v51 }
 0x5a9   : > { %3011 = sbr.rel (%p3648_p7) target bundleno = 1456 (0x5b0), region = 72 }
 0x5ae   : > { %v3004_v57 = vpop.f32.mrb[4].mxu1 }
 0x5af   : > { %v4039_v58 = vpop.f32.mrb[5].mxu1 }
 0x5b0 PF: > { %4040 = vmatprep.subr.mxu0 %v4326_v8  ;;  %v3014_v60 = vld [vmem:[%s4468_s14] sm:$0xff]  ;;  %4042 = vmatprep.mubr.msk.f32.mxu0 %vm4325_vm1, %v4326_v8  ;;  %v3016_v61 = vsel %vm2085_vm4, %v3004_v57, 0  ;;  %p3649_p8 = scmp.ne.s32.totalorder %s4306_s21, 3 }
 0x5b1   : > { %v3019_v62 = vand.u32 4294901760, %v3014_v60  ;;  %4045 = vmatprep.subr.mxu1 %v4326_v8  ;;  %v3084_v63 = vand.u32 4294901760, %v3016_v61  ;;  %4047 = vmatprep.mubr.msk.f32.mxu1 %vm4325_vm1, %v4326_v8  ;;  %v3013_v28 = vld [vmem:[#allocation2] sm:$0xff] }
 0x5b2   : > { %v3650_v33 = vld [vmem:[%s4777_s11] ss:$0 sm:$0xff] (!%p3649_p8) }
 0x5b3   : > { %4041 = vmatpush3.msra.mxu0 %v3019_v62  ;;  %v3085_v1 = vsub.f32 %v3016_v61, %v3084_v63  ;;  %v3096_v2 = vsub.f32 %v3014_v60, %v3019_v62 }
 0x5b4   : > { %4050 = vmatprep.subr.mxu0 %v4326_v8 }
 0x5b5   : > { %v3086_v3 = vand.u32 4294901760, %v3085_v1  ;;  %v3097_v5 = vand.u32 4294901760, %v3096_v2 }
 0x5b7   : > { %v3087_v6 = vsub.f32 %v3085_v1, %v3086_v3  ;;  %v3098_v9 = vsub.f32 %v3096_v2, %v3097_v5 }
 0x5b9   : > { %v3088_v10 = vand.u32 4294901760, %v3087_v6  ;;  %v3099_v7 = vand.u32 4294901760, %v3098_v9 }
 0x5bb   : > { %4043 = vmatmul.mubr.f32.vlgmr.msra.gmra.mrb[4].mxu0 %v3088_v10  ;;  %4046 = vmatpush3.msra.mxu1 %v3099_v7 }
 0x5bc   : > { %4051 = vmatpush3.msra.mxu0 %v3096_v2  ;;  %4048 = vmatmul.mubr.f32.vlgmr.msra.gmra.mrb[6].mxu1 %v3084_v63 }
 0x5bd   : > { %4055 = vmatprep.subr.mxu1 %v4326_v8  ;;  %4052 = vmatprep.mubr.msk.f32.mxu0 %vm4325_vm1, %v4326_v8 }
 0x5be   : > { %4056 = vmatpush3.msra.mxu1 %v3019_v62  ;;  %4060 = vmatprep.subr.mxu0 %v4326_v8 }
 0x5bf   : > { %4053 = vmatmul.mubr.f32.vlgmr.msra.gmra.mrb[6].mxu0 %v3085_v1  ;;  %4057 = vmatprep.mubr.msk.f32.mxu1 %vm4325_vm1, %v4326_v8 }
 0x5c0   : > { %4061 = vmatpush3.msra.mxu0 %v3097_v5  ;;  %4058 = vmatmul.mubr.f32.vlgmr.msra.gmra.mrb[8].mxu1 %v3086_v3 }
 0x5c1   : > { %4065 = vmatprep.subr.mxu1 %v4326_v8  ;;  %4062 = vmatprep.mubr.msk.f32.mxu0 %vm4325_vm1, %v4326_v8 }
 0x5c2   : > { %4066 = vmatpush3.msra.mxu1 %v3019_v62  ;;  %4067 = vmatprep.mubr.msk.f32.mxu1 %vm4325_vm1, %v4326_v8 }
 0x5c3   : > { %4063 = vmatmul.mubr.f32.vlgmr.msra.gmra.mrb[8].mxu0 %v3084_v63 }
 0x5c4   : > { %4068 = vmatmul.mubr.f32.vlgmr.msra.gmra.mrb[10].mxu1 %v3084_v63 }
 0x68e   : > { %v3090_v11 = vpop.f32.mrb[4].mxu0 }
 0x68f   : > { %v4044_v12 = vpop.f32.mrb[5].mxu0  ;;  %v3166_v13 = vpop.f32.mrb[6].mxu1 }
 0x690   : > { %v3167_v14 = vadd.f32 %v3166_v13, %v3090_v11  ;;  %v4049_v15 = vpop.f32.mrb[7].mxu1 }
 0x692   : > { %v3240_v16 = vpop.f32.mrb[6].mxu0 }
 0x693   : > { %v3241_v17 = vadd.f32 %v3240_v16, %v3167_v14  ;;  %v4054_v18 = vpop.f32.mrb[7].mxu0  ;;  %v3314_v19 = vpop.f32.mrb[8].mxu1 }
 0x694   : > { %v4059_v20 = vpop.f32.mrb[9].mxu1 }
 0x695   : > { %v3315_v21 = vadd.f32 %v3314_v19, %v3241_v17 }
 0x696   : > { %v3388_v22 = vpop.f32.mrb[8].mxu0 }
 0x697   : > { %v3389_v24 = vadd.f32 %v3388_v22, %v3315_v21  ;;  %v4064_v25 = vpop.f32.mrb[9].mxu0  ;;  %v3460_v26 = vpop.f32.mrb[10].mxu1  ;;  %3469 = sbr.rel (%p3649_p8) target bundleno = 1706 (0x6aa), region = 76 }
 0x698   : > { %v4069_v29 = vpop.f32.mrb[11].mxu1 }
 0x699   : > { %v3461_v8 = vadd.f32 %v3460_v26, %v3389_v24 }
 0x69b   : > { %v3464_v31 = vadd.f32 %v3461_v8, %v3013_v28 }
 0x69d   : > { %3465 = vst.msk [vmem:[#allocation2] sm:$0xff] %vm557_vm0, %v3464_v31 }
 0x6a4   : > { %v3470_v32 = vld [vmem:[#allocation2] sm:$0xff] }
 0x6a5   : > { %v3471_v4 = vadd.f32 %v3470_v32, %v4437_v0 }
 0x6a7   : > { %v3479_v35 = vadd.f32 %v3650_v33, %v3471_v4 }
 0x6a9   : > { %3480 = vst.msk [vmem:[%s4435_s16] sm:$0xff] %vm557_vm0, %v3479_v35 }
 0x6aa PF: > { %s22_s25 = sadd.s32 1, %s4322_s25   ;;  %s4783_s21 = smov %s4314_s23 }
 0x6ab   : > { %p19_p9 = scmp.ge.s32.totalorder %s22_s25, 10   ;;  %s4784_s22 = smov %s4318_s24 }
 0x6ac   : > { %s4785_s23 = smov %s4788_s26  ;;  %s4786_s24 = smov %s4792_s27 }
 0x6ad   :  { %21 = sbr.rel (!%p19_p9) target bundleno = 4 (0x4), region = 130 }

</bundles_post_ra>
